<compile_context>
chip_gen: v7x
topology: tpu7x:2x2x1
jax: 0.10.0
libtpu: 0.0.40
codegen_flags: <defaults>
</compile_context>

<pallas_src>
import functools

import jax
import jax.numpy as jnp
import numpy as np
from jax.experimental import pallas as pl
from jax.experimental.pallas import tpu as pltpu


def _vmem_limit_bytes():
    """Per-generation VMEM limit: leave headroom vs. physical capacity."""
    try:
        cap = pltpu.get_tpu_info().vmem_capacity_bytes
    except Exception:
        cap = 128 * 1024 * 1024
    # ~3/4 of physical (48 MiB on v7x's 64 MiB, 96 MiB on v5e/v6e's 128 MiB),
    # capped so double-buffered BlockSpec blocks always fit underneath.
    return int(min(cap * 3 // 4, 112 * 1024 * 1024))


def _pack_banded(wt, W):
    """PyTorch Conv3d weight (Cout, Cin, kd, kh, kw) -> (9, W*Cin, W*Cout) bf16.

    For each (kd, kh) tap pair, build the W-banded matrix Wb with
      Wb[wi*C + ci, wo*C + co] = wt[co, ci, kd, kh, wi - wo + 1]
    when 0 <= wi - wo + 1 <= 2, else 0.  Zero padding along W is therefore
    encoded by the missing band entries (no W halo needed in the kernel).
    """
    c_out, c_in = wt.shape[0], wt.shape[1]
    wt_t = jnp.transpose(wt.astype(jnp.float32), (2, 3, 4, 1, 0))  # (kd,kh,kw,ci,co)
    wi = jnp.arange(W)[:, None]
    wo = jnp.arange(W)[None, :]
    kw_idx = wi - wo + 1                                           # (W, W)
    valid = ((kw_idx >= 0) & (kw_idx <= 2)).astype(jnp.float32)
    kw_c = jnp.clip(kw_idx, 0, 2)
    blk = wt_t[:, :, kw_c]                                         # (3,3,W,W,ci,co)
    blk = blk * valid[None, None, :, :, None, None]
    blk = jnp.transpose(blk, (0, 1, 2, 4, 3, 5))                   # (kd,kh,wi,ci,wo,co)
    return blk.reshape(9, W * c_in, W * c_out).astype(jnp.bfloat16)


def _make_kernel(res_scale, D, H, W, C):
    DH = D * H
    WC = W * C
    Dp, Hp = D + 2, H + 2

    def zero_dh_halo(ref):
        # ref: (Dp, Hp, WC) f32. Zero only the 4 D/H halo faces -- each a
        # dense, full-lane-width store. The interior is fully rewritten every
        # step; W-boundary padding is baked into the banded weights.  Done
        # every step (not pl.when(pid==0)) so each TensorCore's private
        # scratch is valid when the "parallel" batch axis is split.
        zh = jnp.zeros((1, Hp, WC), dtype=ref.dtype)
        ref[0:1, :, :] = zh
        ref[Dp - 1:Dp, :, :] = zh
        zd = jnp.zeros((Dp, 1, WC), dtype=ref.dtype)
        ref[:, 0:1, :] = zd
        ref[:, Hp - 1:Hp, :] = zd

    def conv(src_ref, wb_ref):
        # src_ref: (Dp, Hp, WC) f32, zero-padded in D and H only.
        # wb_ref:  (9, WC, WC)  bf16 banded weights (index k = kd*3 + kh).
        # Returns (DH, WC) f32 with columns ordered (w, cout).
        acc = None
        for k in range(9):
            kd, kh = k // 3, k % 3
            stage = src_ref[kd:kd + D, kh:kh + H, :].reshape(DH, WC)
            part = jnp.dot(stage.astype(jnp.bfloat16), wb_ref[k],
                           preferred_element_type=jnp.float32)
            acc = part if acc is None else acc + part
        return acc

    def kernel(x_ref, wb1_ref, b1_ref, wb2_ref, b2_ref, alpha_ref,
               out_ref, xpad_ref, mid_ref):
        zero_dh_halo(xpad_ref)
        zero_dh_halo(mid_ref)

        # In-kernel D/H padding: copy the unpadded sample into the interior.
        x = x_ref[0]                                            # (D, H, WC)
        xpad_ref[1:D + 1, 1:H + 1, :] = x.astype(jnp.float32)

        # ---- conv1 (9 banded matmuls) + bias + PReLU ------------------------
        h = conv(xpad_ref, wb1_ref) + b1_ref[...]               # (DH, WC) f32
        alpha = alpha_ref[0]                                    # shared slope
        h = jnp.where(h >= 0, h, alpha * h)

        # Zero-padded (in D/H) intermediate for conv2.
        mid_ref[1:D + 1, 1:H + 1, :] = h.reshape(D, H, WC)

        # ---- conv2 + bias ----------------------------------------------------
        y = conv(mid_ref, wb2_ref) + b2_ref[...]                # (DH, WC) f32

        # ---- residual add + single dense (lane-width WC) output store -------
        res = x.reshape(DH, WC).astype(jnp.float32) + y * res_scale
        out_ref[0] = res.astype(out_ref.dtype)

    return kernel


@functools.partial(jax.jit, static_argnames=("res_scale",))
def residual_block_no_bn_3d(x_ncdhw, w1, b1, w2, b2, alpha, res_scale=1.0):
    """Pallas implementation. x_ncdhw: (N, C, D, H, W) like PyTorch Conv3d."""
    N, C, D, H, W = x_ncdhw.shape
    DH, WC = D * H, W * C

    # NCDHW -> (N, D, H, W*C): channels-last with W folded into the lane dim.
    x_perm = jnp.transpose(x_ncdhw, (0, 2, 3, 4, 1)).reshape(N, D, H, WC)

    wb1 = _pack_banded(w1, W)                                   # (9, WC, WC) bf16
    wb2 = _pack_banded(w2, W)
    # Per-output-channel bias tiled across W so it broadcasts over (DH, WC).
    b1_k = jnp.tile(b1.astype(jnp.float32), W).reshape(1, WC)
    b2_k = jnp.tile(b2.astype(jnp.float32), W).reshape(1, WC)
    alpha_k = jnp.asarray(alpha, jnp.float32).reshape(1)

    kernel = _make_kernel(float(res_scale), D, H, W, C)

    out = pl.pallas_call(
        kernel,
        out_shape=jax.ShapeDtypeStruct((N, DH, WC), x_ncdhw.dtype),
        grid_spec=pltpu.PrefetchScalarGridSpec(
            num_scalar_prefetch=0,
            grid=(N,),
            in_specs=[
                pl.BlockSpec((1, D, H, WC), lambda n: (n, 0, 0, 0)),
                pl.BlockSpec((9, WC, WC), lambda n: (0, 0, 0)),
                pl.BlockSpec((1, WC), lambda n: (0, 0)),
                pl.BlockSpec((9, WC, WC), lambda n: (0, 0, 0)),
                pl.BlockSpec((1, WC), lambda n: (0, 0)),
                pl.BlockSpec(memory_space=pltpu.MemorySpace.SMEM),
            ],
            out_specs=pl.BlockSpec((1, DH, WC), lambda n: (n, 0, 0)),
            scratch_shapes=[
                pltpu.VMEM((D + 2, H + 2, WC), jnp.float32),   # padded x
                pltpu.VMEM((D + 2, H + 2, WC), jnp.float32),   # padded mid
            ],
        ),
        compiler_params=pltpu.CompilerParams(
            dimension_semantics=("parallel",),
            vmem_limit_bytes=_vmem_limit_bytes()),
    )(x_perm, wb1, b1_k, wb2, b2_k, alpha_k)

    # (N, D*H, W*C) is row-major NDHWC -> free reshape, then back to NCDHW.
    out = out.reshape(N, D, H, W, C)
    return jnp.transpose(out, (0, 4, 1, 2, 3))


def _reference(x, w1, b1, w2, b2, alpha, res_scale):
    """Pure-JAX reference matching the PyTorch forward (NCDHW)."""
    dn = ("NCDHW", "OIDHW", "NCDHW")

    def conv(t, w, b):
        y = jax.lax.conv_general_dilated(
            t, w, window_strides=(1, 1, 1),
            padding=((1, 1), (1, 1), (1, 1)),
            dimension_numbers=dn)
        return y + b.reshape(1, -1, 1, 1, 1)

    h = conv(x, w1, b1)
    h = jnp.where(h >= 0, h, alpha * h)      # PReLU, shared alpha
    out = conv(h, w2, b2)
    return x + out * res_scale


if __name__ == "__main__":
    # Small synthetic config: mid_channels=8, batch=2, D=4, H=8, W=16
    # (W*C = 128 -> one full lane width).
    N, C, D, H, W = 2, 8, 4, 8, 16
    res_scale = 1.0

    key = jax.random.PRNGKey(0)
    kx, kw1, kb1, kw2, kb2 = jax.random.split(key, 5)

    x = jax.random.normal(kx, (N, C, D, H, W), jnp.float32)
    # Conv3d weight shape: (Cout, Cin, 3, 3, 3).
    w1 = jax.random.normal(kw1, (C, C, 3, 3, 3), jnp.float32) * 0.1
    b1 = jax.random.normal(kb1, (C,), jnp.float32) * 0.1
    w2 = jax.random.normal(kw2, (C, C, 3, 3, 3), jnp.float32) * 0.1
    b2 = jax.random.normal(kb2, (C,), jnp.float32) * 0.1
    alpha = jnp.float32(0.25)                 # nn.PReLU() default init

    out = residual_block_no_bn_3d(x, w1, b1, w2, b2, alpha,
                                  res_scale=res_scale)
    out = jax.block_until_ready(out)

    ref = _reference(x, w1, b1, w2, b2, alpha, res_scale)
    # bf16 MXU operands with f32 accumulation -> loosened tolerance.
    np.testing.assert_allclose(np.asarray(out), np.asarray(ref),
                               rtol=5e-2, atol=5e-2)
    print("KERNEL_OK")
</pallas_src>

<mosaic_0001>
module attributes {stable_mosaic.version = 11 : i64} {
  func.func @kernel(%arg0: i32, %arg1: memref<1x4x8x128xf32, #tpu.memory_space<vmem>>, %arg2: memref<9x128x128xbf16, #tpu.memory_space<vmem>>, %arg3: memref<1x128xf32, #tpu.memory_space<vmem>>, %arg4: memref<9x128x128xbf16, #tpu.memory_space<vmem>>, %arg5: memref<1x128xf32, #tpu.memory_space<vmem>>, %arg6: memref<1xf32, #tpu.memory_space<smem>>, %arg7: memref<1x32x128xf32, #tpu.memory_space<vmem>>, %arg8: memref<6x10x128xf32, #tpu.memory_space<vmem>>, %arg9: memref<6x10x128xf32, #tpu.memory_space<vmem>>) attributes {dimension_semantics = [#tpu.dimension_semantics<parallel>], iteration_bounds = array<i64: 2>, scalar_prefetch = 0 : i64, scratch_operands = 2 : i64, tpu.core_type = #tpu.core_type<tc>, window_params = [{transform_indices = @transform_0, window_bounds = array<i64: 1, 4, 8, 128>}, {pipeline_mode = #tpu.pipeline_mode<synchronous>, transform_indices = @transform_1, window_bounds = array<i64: 9, 128, 128>}, {pipeline_mode = #tpu.pipeline_mode<synchronous>, transform_indices = @transform_2, window_bounds = array<i64: 1, 128>}, {pipeline_mode = #tpu.pipeline_mode<synchronous>, transform_indices = @transform_3, window_bounds = array<i64: 9, 128, 128>}, {pipeline_mode = #tpu.pipeline_mode<synchronous>, transform_indices = @transform_4, window_bounds = array<i64: 1, 128>}, {transform_indices = @transform_5, window_bounds = array<i64: 1>}, {transform_indices = @transform_6, window_bounds = array<i64: 1, 32, 128>}]} {
    %cst = arith.constant 0.000000e+00 : f32
    %0 = vector.broadcast %cst : f32 to vector<1x10x128xf32>
    %c0 = arith.constant 0 : index
    %c0_0 = arith.constant 0 : index
    %c0_1 = arith.constant 0 : index
    %1 = vector.load %arg8[%c0, %c0_0, %c0_1] : memref<6x10x128xf32, #tpu.memory_space<vmem>>, vector<1x10x128xf32>
    tpu.vector_store %arg8[%c0, %c0_0, %c0_1], %0 {strides = array<i32>} : memref<6x10x128xf32, #tpu.memory_space<vmem>>, vector<1x10x128xf32>,
    %c5 = arith.constant 5 : index
    %c0_2 = arith.constant 0 : index
    %c0_3 = arith.constant 0 : index
    %2 = vector.load %arg8[%c5, %c0_2, %c0_3] : memref<6x10x128xf32, #tpu.memory_space<vmem>>, vector<1x10x128xf32>
    tpu.vector_store %arg8[%c5, %c0_2, %c0_3], %0 {strides = array<i32>} : memref<6x10x128xf32, #tpu.memory_space<vmem>>, vector<1x10x128xf32>,
    %cst_4 = arith.constant 0.000000e+00 : f32
    %3 = vector.broadcast %cst_4 : f32 to vector<6x1x128xf32>
    %c0_5 = arith.constant 0 : index
    %c0_6 = arith.constant 0 : index
    %c0_7 = arith.constant 0 : index
    %4 = vector.load %arg8[%c0_5, %c0_6, %c0_7] : memref<6x10x128xf32, #tpu.memory_space<vmem>>, vector<6x1x128xf32>
    tpu.vector_store %arg8[%c0_5, %c0_6, %c0_7], %3 {strides = array<i32>} : memref<6x10x128xf32, #tpu.memory_space<vmem>>, vector<6x1x128xf32>,
    %c0_8 = arith.constant 0 : index
    %c9 = arith.constant 9 : index
    %c0_9 = arith.constant 0 : index
    %5 = vector.load %arg8[%c0_8, %c9, %c0_9] : memref<6x10x128xf32, #tpu.memory_space<vmem>>, vector<6x1x128xf32>
    tpu.vector_store %arg8[%c0_8, %c9, %c0_9], %3 {strides = array<i32>} : memref<6x10x128xf32, #tpu.memory_space<vmem>>, vector<6x1x128xf32>,
    %cst_10 = arith.constant 0.000000e+00 : f32
    %6 = vector.broadcast %cst_10 : f32 to vector<1x10x128xf32>
    %c0_11 = arith.constant 0 : index
    %c0_12 = arith.constant 0 : index
    %c0_13 = arith.constant 0 : index
    %7 = vector.load %arg9[%c0_11, %c0_12, %c0_13] : memref<6x10x128xf32, #tpu.memory_space<vmem>>, vector<1x10x128xf32>
    tpu.vector_store %arg9[%c0_11, %c0_12, %c0_13], %6 {strides = array<i32>} : memref<6x10x128xf32, #tpu.memory_space<vmem>>, vector<1x10x128xf32>,
    %c5_14 = arith.constant 5 : index
    %c0_15 = arith.constant 0 : index
    %c0_16 = arith.constant 0 : index
    %8 = vector.load %arg9[%c5_14, %c0_15, %c0_16] : memref<6x10x128xf32, #tpu.memory_space<vmem>>, vector<1x10x128xf32>
    tpu.vector_store %arg9[%c5_14, %c0_15, %c0_16], %6 {strides = array<i32>} : memref<6x10x128xf32, #tpu.memory_space<vmem>>, vector<1x10x128xf32>,
    %cst_17 = arith.constant 0.000000e+00 : f32
    %9 = vector.broadcast %cst_17 : f32 to vector<6x1x128xf32>
    %c0_18 = arith.constant 0 : index
    %c0_19 = arith.constant 0 : index
    %c0_20 = arith.constant 0 : index
    %10 = vector.load %arg9[%c0_18, %c0_19, %c0_20] : memref<6x10x128xf32, #tpu.memory_space<vmem>>, vector<6x1x128xf32>
    tpu.vector_store %arg9[%c0_18, %c0_19, %c0_20], %9 {strides = array<i32>} : memref<6x10x128xf32, #tpu.memory_space<vmem>>, vector<6x1x128xf32>,
    %c0_21 = arith.constant 0 : index
    %c9_22 = arith.constant 9 : index
    %c0_23 = arith.constant 0 : index
    %11 = vector.load %arg9[%c0_21, %c9_22, %c0_23] : memref<6x10x128xf32, #tpu.memory_space<vmem>>, vector<6x1x128xf32>
    tpu.vector_store %arg9[%c0_21, %c9_22, %c0_23], %9 {strides = array<i32>} : memref<6x10x128xf32, #tpu.memory_space<vmem>>, vector<6x1x128xf32>,
    %c0_24 = arith.constant 0 : index
    %c0_25 = arith.constant 0 : index
    %c0_26 = arith.constant 0 : index
    %c0_27 = arith.constant 0 : index
    %12 = vector.load %arg1[%c0_24, %c0_25, %c0_26, %c0_27] : memref<1x4x8x128xf32, #tpu.memory_space<vmem>>, vector<1x4x8x128xf32>
    %13 = vector.shape_cast %12 : vector<1x4x8x128xf32> to vector<4x8x128xf32>
    %c1 = arith.constant 1 : index
    %c1_28 = arith.constant 1 : index
    %c0_29 = arith.constant 0 : index
    %14 = vector.load %arg8[%c1, %c1_28, %c0_29] : memref<6x10x128xf32, #tpu.memory_space<vmem>>, vector<4x8x128xf32>
    tpu.vector_store %arg8[%c1, %c1_28, %c0_29], %13 {strides = array<i32>} : memref<6x10x128xf32, #tpu.memory_space<vmem>>, vector<4x8x128xf32>,
    %c0_30 = arith.constant 0 : index
    %c0_31 = arith.constant 0 : index
    %c0_32 = arith.constant 0 : index
    %15 = vector.load %arg8[%c0_30, %c0_31, %c0_32] : memref<6x10x128xf32, #tpu.memory_space<vmem>>, vector<4x8x128xf32>
    %16 = vector.shape_cast %15 : vector<4x8x128xf32> to vector<32x128xf32>
    %17 = arith.truncf %16 : vector<32x128xf32> to vector<32x128xbf16>
    %c0_33 = arith.constant 0 : index
    %c0_34 = arith.constant 0 : index
    %c0_35 = arith.constant 0 : index
    %18 = vector.load %arg2[%c0_33, %c0_34, %c0_35] : memref<9x128x128xbf16, #tpu.memory_space<vmem>>, vector<1x128x128xbf16>
    %19 = vector.shape_cast %18 : vector<1x128x128xbf16> to vector<128x128xbf16>
    %cst_36 = arith.constant dense<0.000000e+00> : vector<32x128xf32>
    %20 = tpu.matmul %17, %19, %cst_36 {dimension_numbers = #tpu.dot_dimension_numbers<[1], [0], [0], [1], [0, 0, 1, 1], [], []>} : vector<32x128xbf16>, vector<128x128xbf16>, vector<32x128xf32> -> vector<32x128xf32>
    %c0_37 = arith.constant 0 : index
    %c1_38 = arith.constant 1 : index
    %c0_39 = arith.constant 0 : index
    %21 = vector.load %arg8[%c0_37, %c1_38, %c0_39] : memref<6x10x128xf32, #tpu.memory_space<vmem>>, vector<4x8x128xf32>
    %22 = vector.shape_cast %21 : vector<4x8x128xf32> to vector<32x128xf32>
    %23 = arith.truncf %22 : vector<32x128xf32> to vector<32x128xbf16>
    %c1_40 = arith.constant 1 : index
    %c0_41 = arith.constant 0 : index
    %c0_42 = arith.constant 0 : index
    %24 = vector.load %arg2[%c1_40, %c0_41, %c0_42] : memref<9x128x128xbf16, #tpu.memory_space<vmem>>, vector<1x128x128xbf16>
    %25 = vector.shape_cast %24 : vector<1x128x128xbf16> to vector<128x128xbf16>
    %cst_43 = arith.constant dense<0.000000e+00> : vector<32x128xf32>
    %26 = tpu.matmul %23, %25, %cst_43 {dimension_numbers = #tpu.dot_dimension_numbers<[1], [0], [0], [1], [0, 0, 1, 1], [], []>} : vector<32x128xbf16>, vector<128x128xbf16>, vector<32x128xf32> -> vector<32x128xf32>
    %27 = arith.addf %20, %26 : vector<32x128xf32>
    %c0_44 = arith.constant 0 : index
    %c2 = arith.constant 2 : index
    %c0_45 = arith.constant 0 : index
    %28 = vector.load %arg8[%c0_44, %c2, %c0_45] : memref<6x10x128xf32, #tpu.memory_space<vmem>>, vector<4x8x128xf32>
    %29 = vector.shape_cast %28 : vector<4x8x128xf32> to vector<32x128xf32>
    %30 = arith.truncf %29 : vector<32x128xf32> to vector<32x128xbf16>
    %c2_46 = arith.constant 2 : index
    %c0_47 = arith.constant 0 : index
    %c0_48 = arith.constant 0 : index
    %31 = vector.load %arg2[%c2_46, %c0_47, %c0_48] : memref<9x128x128xbf16, #tpu.memory_space<vmem>>, vector<1x128x128xbf16>
    %32 = vector.shape_cast %31 : vector<1x128x128xbf16> to vector<128x128xbf16>
    %cst_49 = arith.constant dense<0.000000e+00> : vector<32x128xf32>
    %33 = tpu.matmul %30, %32, %cst_49 {dimension_numbers = #tpu.dot_dimension_numbers<[1], [0], [0], [1], [0, 0, 1, 1], [], []>} : vector<32x128xbf16>, vector<128x128xbf16>, vector<32x128xf32> -> vector<32x128xf32>
    %34 = arith.addf %27, %33 : vector<32x128xf32>
    %c1_50 = arith.constant 1 : index
    %c0_51 = arith.constant 0 : index
    %c0_52 = arith.constant 0 : index
    %35 = vector.load %arg8[%c1_50, %c0_51, %c0_52] : memref<6x10x128xf32, #tpu.memory_space<vmem>>, vector<4x8x128xf32>
    %36 = vector.shape_cast %35 : vector<4x8x128xf32> to vector<32x128xf32>
    %37 = arith.truncf %36 : vector<32x128xf32> to vector<32x128xbf16>
    %c3 = arith.constant 3 : index
    %c0_53 = arith.constant 0 : index
    %c0_54 = arith.constant 0 : index
    %38 = vector.load %arg2[%c3, %c0_53, %c0_54] : memref<9x128x128xbf16, #tpu.memory_space<vmem>>, vector<1x128x128xbf16>
    %39 = vector.shape_cast %38 : vector<1x128x128xbf16> to vector<128x128xbf16>
    %cst_55 = arith.constant dense<0.000000e+00> : vector<32x128xf32>
    %40 = tpu.matmul %37, %39, %cst_55 {dimension_numbers = #tpu.dot_dimension_numbers<[1], [0], [0], [1], [0, 0, 1, 1], [], []>} : vector<32x128xbf16>, vector<128x128xbf16>, vector<32x128xf32> -> vector<32x128xf32>
    %41 = arith.addf %34, %40 : vector<32x128xf32>
    %c1_56 = arith.constant 1 : index
    %c1_57 = arith.constant 1 : index
    %c0_58 = arith.constant 0 : index
    %42 = vector.load %arg8[%c1_56, %c1_57, %c0_58] : memref<6x10x128xf32, #tpu.memory_space<vmem>>, vector<4x8x128xf32>
    %43 = vector.shape_cast %42 : vector<4x8x128xf32> to vector<32x128xf32>
    %44 = arith.truncf %43 : vector<32x128xf32> to vector<32x128xbf16>
    %c4 = arith.constant 4 : index
    %c0_59 = arith.constant 0 : index
    %c0_60 = arith.constant 0 : index
    %45 = vector.load %arg2[%c4, %c0_59, %c0_60] : memref<9x128x128xbf16, #tpu.memory_space<vmem>>, vector<1x128x128xbf16>
    %46 = vector.shape_cast %45 : vector<1x128x128xbf16> to vector<128x128xbf16>
    %cst_61 = arith.constant dense<0.000000e+00> : vector<32x128xf32>
    %47 = tpu.matmul %44, %46, %cst_61 {dimension_numbers = #tpu.dot_dimension_numbers<[1], [0], [0], [1], [0, 0, 1, 1], [], []>} : vector<32x128xbf16>, vector<128x128xbf16>, vector<32x128xf32> -> vector<32x128xf32>
    %48 = arith.addf %41, %47 : vector<32x128xf32>
    %c1_62 = arith.constant 1 : index
    %c2_63 = arith.constant 2 : index
    %c0_64 = arith.constant 0 : index
    %49 = vector.load %arg8[%c1_62, %c2_63, %c0_64] : memref<6x10x128xf32, #tpu.memory_space<vmem>>, vector<4x8x128xf32>
    %50 = vector.shape_cast %49 : vector<4x8x128xf32> to vector<32x128xf32>
    %51 = arith.truncf %50 : vector<32x128xf32> to vector<32x128xbf16>
    %c5_65 = arith.constant 5 : index
    %c0_66 = arith.constant 0 : index
    %c0_67 = arith.constant 0 : index
    %52 = vector.load %arg2[%c5_65, %c0_66, %c0_67] : memref<9x128x128xbf16, #tpu.memory_space<vmem>>, vector<1x128x128xbf16>
    %53 = vector.shape_cast %52 : vector<1x128x128xbf16> to vector<128x128xbf16>
    %cst_68 = arith.constant dense<0.000000e+00> : vector<32x128xf32>
    %54 = tpu.matmul %51, %53, %cst_68 {dimension_numbers = #tpu.dot_dimension_numbers<[1], [0], [0], [1], [0, 0, 1, 1], [], []>} : vector<32x128xbf16>, vector<128x128xbf16>, vector<32x128xf32> -> vector<32x128xf32>
    %55 = arith.addf %48, %54 : vector<32x128xf32>
    %c2_69 = arith.constant 2 : index
    %c0_70 = arith.constant 0 : index
    %c0_71 = arith.constant 0 : index
    %56 = vector.load %arg8[%c2_69, %c0_70, %c0_71] : memref<6x10x128xf32, #tpu.memory_space<vmem>>, vector<4x8x128xf32>
    %57 = vector.shape_cast %56 : vector<4x8x128xf32> to vector<32x128xf32>
    %58 = arith.truncf %57 : vector<32x128xf32> to vector<32x128xbf16>
    %c6 = arith.constant 6 : index
    %c0_72 = arith.constant 0 : index
    %c0_73 = arith.constant 0 : index
    %59 = vector.load %arg2[%c6, %c0_72, %c0_73] : memref<9x128x128xbf16, #tpu.memory_space<vmem>>, vector<1x128x128xbf16>
    %60 = vector.shape_cast %59 : vector<1x128x128xbf16> to vector<128x128xbf16>
    %cst_74 = arith.constant dense<0.000000e+00> : vector<32x128xf32>
    %61 = tpu.matmul %58, %60, %cst_74 {dimension_numbers = #tpu.dot_dimension_numbers<[1], [0], [0], [1], [0, 0, 1, 1], [], []>} : vector<32x128xbf16>, vector<128x128xbf16>, vector<32x128xf32> -> vector<32x128xf32>
    %62 = arith.addf %55, %61 : vector<32x128xf32>
    %c2_75 = arith.constant 2 : index
    %c1_76 = arith.constant 1 : index
    %c0_77 = arith.constant 0 : index
    %63 = vector.load %arg8[%c2_75, %c1_76, %c0_77] : memref<6x10x128xf32, #tpu.memory_space<vmem>>, vector<4x8x128xf32>
    %64 = vector.shape_cast %63 : vector<4x8x128xf32> to vector<32x128xf32>
    %65 = arith.truncf %64 : vector<32x128xf32> to vector<32x128xbf16>
    %c7 = arith.constant 7 : index
    %c0_78 = arith.constant 0 : index
    %c0_79 = arith.constant 0 : index
    %66 = vector.load %arg2[%c7, %c0_78, %c0_79] : memref<9x128x128xbf16, #tpu.memory_space<vmem>>, vector<1x128x128xbf16>
    %67 = vector.shape_cast %66 : vector<1x128x128xbf16> to vector<128x128xbf16>
    %cst_80 = arith.constant dense<0.000000e+00> : vector<32x128xf32>
    %68 = tpu.matmul %65, %67, %cst_80 {dimension_numbers = #tpu.dot_dimension_numbers<[1], [0], [0], [1], [0, 0, 1, 1], [], []>} : vector<32x128xbf16>, vector<128x128xbf16>, vector<32x128xf32> -> vector<32x128xf32>
    %69 = arith.addf %62, %68 : vector<32x128xf32>
    %c2_81 = arith.constant 2 : index
    %c2_82 = arith.constant 2 : index
    %c0_83 = arith.constant 0 : index
    %70 = vector.load %arg8[%c2_81, %c2_82, %c0_83] : memref<6x10x128xf32, #tpu.memory_space<vmem>>, vector<4x8x128xf32>
    %71 = vector.shape_cast %70 : vector<4x8x128xf32> to vector<32x128xf32>
    %72 = arith.truncf %71 : vector<32x128xf32> to vector<32x128xbf16>
    %c8 = arith.constant 8 : index
    %c0_84 = arith.constant 0 : index
    %c0_85 = arith.constant 0 : index
    %73 = vector.load %arg2[%c8, %c0_84, %c0_85] : memref<9x128x128xbf16, #tpu.memory_space<vmem>>, vector<1x128x128xbf16>
    %74 = vector.shape_cast %73 : vector<1x128x128xbf16> to vector<128x128xbf16>
    %cst_86 = arith.constant dense<0.000000e+00> : vector<32x128xf32>
    %75 = tpu.matmul %72, %74, %cst_86 {dimension_numbers = #tpu.dot_dimension_numbers<[1], [0], [0], [1], [0, 0, 1, 1], [], []>} : vector<32x128xbf16>, vector<128x128xbf16>, vector<32x128xf32> -> vector<32x128xf32>
    %76 = arith.addf %69, %75 : vector<32x128xf32>
    %c0_87 = arith.constant 0 : index
    %c0_88 = arith.constant 0 : index
    %77 = vector.load %arg3[%c0_87, %c0_88] : memref<1x128xf32, #tpu.memory_space<vmem>>, vector<1x128xf32>
    %78 = vector.broadcast %77 : vector<1x128xf32> to vector<32x128xf32>
    %79 = arith.addf %76, %78 : vector<32x128xf32>
    %c0_89 = arith.constant 0 : index
    %80 = memref.load %arg6[%c0_89] : memref<1xf32, #tpu.memory_space<smem>>
    %cst_90 = arith.constant 0.000000e+00 : f32
    %81 = vector.broadcast %cst_90 : f32 to vector<32x128xf32>
    %82 = arith.cmpf oge, %79, %81 : vector<32x128xf32>
    %83 = vector.broadcast %80 : f32 to vector<32x128xf32>
    %84 = arith.mulf %83, %79 : vector<32x128xf32>
    %85 = arith.select %82, %79, %84 : vector<32x128xi1>, vector<32x128xf32>
    %86 = vector.shape_cast %85 : vector<32x128xf32> to vector<4x8x128xf32>
    %c1_91 = arith.constant 1 : index
    %c1_92 = arith.constant 1 : index
    %c0_93 = arith.constant 0 : index
    %87 = vector.load %arg9[%c1_91, %c1_92, %c0_93] : memref<6x10x128xf32, #tpu.memory_space<vmem>>, vector<4x8x128xf32>
    tpu.vector_store %arg9[%c1_91, %c1_92, %c0_93], %86 {strides = array<i32>} : memref<6x10x128xf32, #tpu.memory_space<vmem>>, vector<4x8x128xf32>,
    %c0_94 = arith.constant 0 : index
    %c0_95 = arith.constant 0 : index
    %c0_96 = arith.constant 0 : index
    %88 = vector.load %arg9[%c0_94, %c0_95, %c0_96] : memref<6x10x128xf32, #tpu.memory_space<vmem>>, vector<4x8x128xf32>
    %89 = vector.shape_cast %88 : vector<4x8x128xf32> to vector<32x128xf32>
    %90 = arith.truncf %89 : vector<32x128xf32> to vector<32x128xbf16>
    %c0_97 = arith.constant 0 : index
    %c0_98 = arith.constant 0 : index
    %c0_99 = arith.constant 0 : index
    %91 = vector.load %arg4[%c0_97, %c0_98, %c0_99] : memref<9x128x128xbf16, #tpu.memory_space<vmem>>, vector<1x128x128xbf16>
    %92 = vector.shape_cast %91 : vector<1x128x128xbf16> to vector<128x128xbf16>
    %cst_100 = arith.constant dense<0.000000e+00> : vector<32x128xf32>
    %93 = tpu.matmul %90, %92, %cst_100 {dimension_numbers = #tpu.dot_dimension_numbers<[1], [0], [0], [1], [0, 0, 1, 1], [], []>} : vector<32x128xbf16>, vector<128x128xbf16>, vector<32x128xf32> -> vector<32x128xf32>
    %c0_101 = arith.constant 0 : index
    %c1_102 = arith.constant 1 : index
    %c0_103 = arith.constant 0 : index
    %94 = vector.load %arg9[%c0_101, %c1_102, %c0_103] : memref<6x10x128xf32, #tpu.memory_space<vmem>>, vector<4x8x128xf32>
    %95 = vector.shape_cast %94 : vector<4x8x128xf32> to vector<32x128xf32>
    %96 = arith.truncf %95 : vector<32x128xf32> to vector<32x128xbf16>
    %c1_104 = arith.constant 1 : index
    %c0_105 = arith.constant 0 : index
    %c0_106 = arith.constant 0 : index
    %97 = vector.load %arg4[%c1_104, %c0_105, %c0_106] : memref<9x128x128xbf16, #tpu.memory_space<vmem>>, vector<1x128x128xbf16>
    %98 = vector.shape_cast %97 : vector<1x128x128xbf16> to vector<128x128xbf16>
    %cst_107 = arith.constant dense<0.000000e+00> : vector<32x128xf32>
    %99 = tpu.matmul %96, %98, %cst_107 {dimension_numbers = #tpu.dot_dimension_numbers<[1], [0], [0], [1], [0, 0, 1, 1], [], []>} : vector<32x128xbf16>, vector<128x128xbf16>, vector<32x128xf32> -> vector<32x128xf32>
    %100 = arith.addf %93, %99 : vector<32x128xf32>
    %c0_108 = arith.constant 0 : index
    %c2_109 = arith.constant 2 : index
    %c0_110 = arith.constant 0 : index
    %101 = vector.load %arg9[%c0_108, %c2_109, %c0_110] : memref<6x10x128xf32, #tpu.memory_space<vmem>>, vector<4x8x128xf32>
    %102 = vector.shape_cast %101 : vector<4x8x128xf32> to vector<32x128xf32>
    %103 = arith.truncf %102 : vector<32x128xf32> to vector<32x128xbf16>
    %c2_111 = arith.constant 2 : index
    %c0_112 = arith.constant 0 : index
    %c0_113 = arith.constant 0 : index
    %104 = vector.load %arg4[%c2_111, %c0_112, %c0_113] : memref<9x128x128xbf16, #tpu.memory_space<vmem>>, vector<1x128x128xbf16>
    %105 = vector.shape_cast %104 : vector<1x128x128xbf16> to vector<128x128xbf16>
    %cst_114 = arith.constant dense<0.000000e+00> : vector<32x128xf32>
    %106 = tpu.matmul %103, %105, %cst_114 {dimension_numbers = #tpu.dot_dimension_numbers<[1], [0], [0], [1], [0, 0, 1, 1], [], []>} : vector<32x128xbf16>, vector<128x128xbf16>, vector<32x128xf32> -> vector<32x128xf32>
    %107 = arith.addf %100, %106 : vector<32x128xf32>
    %c1_115 = arith.constant 1 : index
    %c0_116 = arith.constant 0 : index
    %c0_117 = arith.constant 0 : index
    %108 = vector.load %arg9[%c1_115, %c0_116, %c0_117] : memref<6x10x128xf32, #tpu.memory_space<vmem>>, vector<4x8x128xf32>
    %109 = vector.shape_cast %108 : vector<4x8x128xf32> to vector<32x128xf32>
    %110 = arith.truncf %109 : vector<32x128xf32> to vector<32x128xbf16>
    %c3_118 = arith.constant 3 : index
    %c0_119 = arith.constant 0 : index
    %c0_120 = arith.constant 0 : index
    %111 = vector.load %arg4[%c3_118, %c0_119, %c0_120] : memref<9x128x128xbf16, #tpu.memory_space<vmem>>, vector<1x128x128xbf16>
    %112 = vector.shape_cast %111 : vector<1x128x128xbf16> to vector<128x128xbf16>
    %cst_121 = arith.constant dense<0.000000e+00> : vector<32x128xf32>
    %113 = tpu.matmul %110, %112, %cst_121 {dimension_numbers = #tpu.dot_dimension_numbers<[1], [0], [0], [1], [0, 0, 1, 1], [], []>} : vector<32x128xbf16>, vector<128x128xbf16>, vector<32x128xf32> -> vector<32x128xf32>
    %114 = arith.addf %107, %113 : vector<32x128xf32>
    %c1_122 = arith.constant 1 : index
    %c1_123 = arith.constant 1 : index
    %c0_124 = arith.constant 0 : index
    %115 = vector.load %arg9[%c1_122, %c1_123, %c0_124] : memref<6x10x128xf32, #tpu.memory_space<vmem>>, vector<4x8x128xf32>
    %116 = vector.shape_cast %115 : vector<4x8x128xf32> to vector<32x128xf32>
    %117 = arith.truncf %116 : vector<32x128xf32> to vector<32x128xbf16>
    %c4_125 = arith.constant 4 : index
    %c0_126 = arith.constant 0 : index
    %c0_127 = arith.constant 0 : index
    %118 = vector.load %arg4[%c4_125, %c0_126, %c0_127] : memref<9x128x128xbf16, #tpu.memory_space<vmem>>, vector<1x128x128xbf16>
    %119 = vector.shape_cast %118 : vector<1x128x128xbf16> to vector<128x128xbf16>
    %cst_128 = arith.constant dense<0.000000e+00> : vector<32x128xf32>
    %120 = tpu.matmul %117, %119, %cst_128 {dimension_numbers = #tpu.dot_dimension_numbers<[1], [0], [0], [1], [0, 0, 1, 1], [], []>} : vector<32x128xbf16>, vector<128x128xbf16>, vector<32x128xf32> -> vector<32x128xf32>
    %121 = arith.addf %114, %120 : vector<32x128xf32>
    %c1_129 = arith.constant 1 : index
    %c2_130 = arith.constant 2 : index
    %c0_131 = arith.constant 0 : index
    %122 = vector.load %arg9[%c1_129, %c2_130, %c0_131] : memref<6x10x128xf32, #tpu.memory_space<vmem>>, vector<4x8x128xf32>
    %123 = vector.shape_cast %122 : vector<4x8x128xf32> to vector<32x128xf32>
    %124 = arith.truncf %123 : vector<32x128xf32> to vector<32x128xbf16>
    %c5_132 = arith.constant 5 : index
    %c0_133 = arith.constant 0 : index
    %c0_134 = arith.constant 0 : index
    %125 = vector.load %arg4[%c5_132, %c0_133, %c0_134] : memref<9x128x128xbf16, #tpu.memory_space<vmem>>, vector<1x128x128xbf16>
    %126 = vector.shape_cast %125 : vector<1x128x128xbf16> to vector<128x128xbf16>
    %cst_135 = arith.constant dense<0.000000e+00> : vector<32x128xf32>
    %127 = tpu.matmul %124, %126, %cst_135 {dimension_numbers = #tpu.dot_dimension_numbers<[1], [0], [0], [1], [0, 0, 1, 1], [], []>} : vector<32x128xbf16>, vector<128x128xbf16>, vector<32x128xf32> -> vector<32x128xf32>
    %128 = arith.addf %121, %127 : vector<32x128xf32>
    %c2_136 = arith.constant 2 : index
    %c0_137 = arith.constant 0 : index
    %c0_138 = arith.constant 0 : index
    %129 = vector.load %arg9[%c2_136, %c0_137, %c0_138] : memref<6x10x128xf32, #tpu.memory_space<vmem>>, vector<4x8x128xf32>
    %130 = vector.shape_cast %129 : vector<4x8x128xf32> to vector<32x128xf32>
    %131 = arith.truncf %130 : vector<32x128xf32> to vector<32x128xbf16>
    %c6_139 = arith.constant 6 : index
    %c0_140 = arith.constant 0 : index
    %c0_141 = arith.constant 0 : index
    %132 = vector.load %arg4[%c6_139, %c0_140, %c0_141] : memref<9x128x128xbf16, #tpu.memory_space<vmem>>, vector<1x128x128xbf16>
    %133 = vector.shape_cast %132 : vector<1x128x128xbf16> to vector<128x128xbf16>
    %cst_142 = arith.constant dense<0.000000e+00> : vector<32x128xf32>
    %134 = tpu.matmul %131, %133, %cst_142 {dimension_numbers = #tpu.dot_dimension_numbers<[1], [0], [0], [1], [0, 0, 1, 1], [], []>} : vector<32x128xbf16>, vector<128x128xbf16>, vector<32x128xf32> -> vector<32x128xf32>
    %135 = arith.addf %128, %134 : vector<32x128xf32>
    %c2_143 = arith.constant 2 : index
    %c1_144 = arith.constant 1 : index
    %c0_145 = arith.constant 0 : index
    %136 = vector.load %arg9[%c2_143, %c1_144, %c0_145] : memref<6x10x128xf32, #tpu.memory_space<vmem>>, vector<4x8x128xf32>
    %137 = vector.shape_cast %136 : vector<4x8x128xf32> to vector<32x128xf32>
    %138 = arith.truncf %137 : vector<32x128xf32> to vector<32x128xbf16>
    %c7_146 = arith.constant 7 : index
    %c0_147 = arith.constant 0 : index
    %c0_148 = arith.constant 0 : index
    %139 = vector.load %arg4[%c7_146, %c0_147, %c0_148] : memref<9x128x128xbf16, #tpu.memory_space<vmem>>, vector<1x128x128xbf16>
    %140 = vector.shape_cast %139 : vector<1x128x128xbf16> to vector<128x128xbf16>
    %cst_149 = arith.constant dense<0.000000e+00> : vector<32x128xf32>
    %141 = tpu.matmul %138, %140, %cst_149 {dimension_numbers = #tpu.dot_dimension_numbers<[1], [0], [0], [1], [0, 0, 1, 1], [], []>} : vector<32x128xbf16>, vector<128x128xbf16>, vector<32x128xf32> -> vector<32x128xf32>
    %142 = arith.addf %135, %141 : vector<32x128xf32>
    %c2_150 = arith.constant 2 : index
    %c2_151 = arith.constant 2 : index
    %c0_152 = arith.constant 0 : index
    %143 = vector.load %arg9[%c2_150, %c2_151, %c0_152] : memref<6x10x128xf32, #tpu.memory_space<vmem>>, vector<4x8x128xf32>
    %144 = vector.shape_cast %143 : vector<4x8x128xf32> to vector<32x128xf32>
    %145 = arith.truncf %144 : vector<32x128xf32> to vector<32x128xbf16>
    %c8_153 = arith.constant 8 : index
    %c0_154 = arith.constant 0 : index
    %c0_155 = arith.constant 0 : index
    %146 = vector.load %arg4[%c8_153, %c0_154, %c0_155] : memref<9x128x128xbf16, #tpu.memory_space<vmem>>, vector<1x128x128xbf16>
    %147 = vector.shape_cast %146 : vector<1x128x128xbf16> to vector<128x128xbf16>
    %cst_156 = arith.constant dense<0.000000e+00> : vector<32x128xf32>
    %148 = tpu.matmul %145, %147, %cst_156 {dimension_numbers = #tpu.dot_dimension_numbers<[1], [0], [0], [1], [0, 0, 1, 1], [], []>} : vector<32x128xbf16>, vector<128x128xbf16>, vector<32x128xf32> -> vector<32x128xf32>
    %149 = arith.addf %142, %148 : vector<32x128xf32>
    %c0_157 = arith.constant 0 : index
    %c0_158 = arith.constant 0 : index
    %150 = vector.load %arg5[%c0_157, %c0_158] : memref<1x128xf32, #tpu.memory_space<vmem>>, vector<1x128xf32>
    %151 = vector.broadcast %150 : vector<1x128xf32> to vector<32x128xf32>
    %152 = arith.addf %149, %151 : vector<32x128xf32>
    %153 = vector.shape_cast %13 : vector<4x8x128xf32> to vector<32x128xf32>
    %cst_159 = arith.constant 1.000000e+00 : f32
    %154 = vector.broadcast %cst_159 : f32 to vector<32x128xf32>
    %155 = arith.mulf %152, %154 : vector<32x128xf32>
    %156 = arith.addf %153, %155 : vector<32x128xf32>
    %c0_160 = arith.constant 0 : index
    %c0_161 = arith.constant 0 : index
    %c0_162 = arith.constant 0 : index
    %157 = vector.load %arg7[%c0_160, %c0_161, %c0_162] : memref<1x32x128xf32, #tpu.memory_space<vmem>>, vector<1x32x128xf32>
    %158 = vector.shape_cast %157 : vector<1x32x128xf32> to vector<32x128xf32>
    %159 = vector.shape_cast %156 : vector<32x128xf32> to vector<1x32x128xf32>
    tpu.vector_store %arg7[%c0_160, %c0_161, %c0_162], %159 {strides = array<i32>} : memref<1x32x128xf32, #tpu.memory_space<vmem>>, vector<1x32x128xf32>,
    return
  }
  func.func @transform_0(%arg0: i32) -> (i32, i32, i32, i32) {
    %c0_i32 = arith.constant 0 : i32
    %c0_i32_0 = arith.constant 0 : i32
    %c0_i32_1 = arith.constant 0 : i32
    %c0_i32_2 = arith.constant 0 : i32
    return %arg0, %c0_i32, %c0_i32_0, %c0_i32_1 : i32, i32, i32, i32
  }
  func.func @transform_1(%arg0: i32) -> (i32, i32, i32) {
    %c0_i32 = arith.constant 0 : i32
    %c0_i32_0 = arith.constant 0 : i32
    %c0_i32_1 = arith.constant 0 : i32
    %c0_i32_2 = arith.constant 0 : i32
    return %c0_i32, %c0_i32_0, %c0_i32_1 : i32, i32, i32
  }
  func.func @transform_2(%arg0: i32) -> (i32, i32) {
    %c0_i32 = arith.constant 0 : i32
    %c0_i32_0 = arith.constant 0 : i32
    %c0_i32_1 = arith.constant 0 : i32
    return %c0_i32, %c0_i32_0 : i32, i32
  }
  func.func @transform_3(%arg0: i32) -> (i32, i32, i32) {
    %c0_i32 = arith.constant 0 : i32
    %c0_i32_0 = arith.constant 0 : i32
    %c0_i32_1 = arith.constant 0 : i32
    %c0_i32_2 = arith.constant 0 : i32
    return %c0_i32, %c0_i32_0, %c0_i32_1 : i32, i32, i32
  }
  func.func @transform_4(%arg0: i32) -> (i32, i32) {
    %c0_i32 = arith.constant 0 : i32
    %c0_i32_0 = arith.constant 0 : i32
    %c0_i32_1 = arith.constant 0 : i32
    return %c0_i32, %c0_i32_0 : i32, i32
  }
  func.func @transform_5(%arg0: i32) -> i32 {
    %c0_i32 = arith.constant 0 : i32
    %c0_i32_0 = arith.constant 0 : i32
    return %c0_i32 : i32
  }
  func.func @transform_6(%arg0: i32) -> (i32, i32, i32) {
    %c0_i32 = arith.constant 0 : i32
    %c0_i32_0 = arith.constant 0 : i32
    %c0_i32_1 = arith.constant 0 : i32
    return %arg0, %c0_i32, %c0_i32_0 : i32, i32, i32
  }
}

</mosaic_0001>

<bundles_post_ra>
// kernel: tile.13
= control target key start
LH: loop header
LB: loop body
LE: loop exit
PB: predicated region body
PF: predicated region fallthrough
CT: control target
= control target key end

     0   :  { %s28_s0 = inlined_call_operand.vmem [shape: f32[8], index: 0, kind: input, shape index: {}]   ;;  %s29_s1 = inlined_call_operand.vmem [shape: f32[16,8], index: 1, kind: output, shape index: {}]  }
   0x1   :  { %v4_v0 = vld [vmem:[%s28_s0] ss:$0 sm:$0xff] }
   0x2   :  { %5 = vst [vmem:[%s29_s1] sm:$0xff] %v4_v0  ;;  %8 = vst [vmem:[%s29_s1 + $0x8] sm:$0xff] %v4_v0 }

// kernel: tile.14
= control target key start
LH: loop header
LB: loop body
LE: loop exit
PB: predicated region body
PF: predicated region fallthrough
CT: control target
= control target key end

     0   :  { %s167_s10 = smov 120   ;;  %s168_s11 = smov 104   ;;  %vm4_vm0 = vcmask 64512   ;;  %s253_s0 = inlined_call_operand.vmem [shape: f32[16,8], index: 0, kind: input, shape index: {}]   ;;  %s254_s1 = inlined_call_operand.hbm [shape: f32[1,128], index: 1, kind: output, shape index: {}]  }
   0x1   :  { %v112_v0 = vld [vmem:[%s253_s0 + $0xf] sm:$0x1]   ;;  %v114_v1 = vld [vmem:[%s253_s0 + $0xd] sm:$0x1]   ;;  %v113_v2 = vld [vmem:[%s253_s0 + $0xe] sm:$0x1]  }
   0x2   :  { %8 = vrot.lane.b32.xlu0 %v112_v0, %s167_s10  ;;  %20 = vrot.lane.b32.xlu1 %v114_v1, %s168_s11  ;;  %v115_v3 = vld [vmem:[%s253_s0 + $0xc] sm:$0x1]   ;;  %s169_s16 = smov 112   ;;  %s170_s17 = smov 96   ;;  %v116_v4 = vld [vmem:[%s253_s0 + $0xb] sm:$0x1]  }
   0x3   :  { %v117_v5 = vld [vmem:[%s253_s0 + $0xa] sm:$0x1]   ;;  %v3_v6 = vld [vmem:[%s253_s0] sm:$0x1]  }
   0x6   :  { %14 = vrot.lane.b32.xlu0 %v113_v2, %s169_s16  ;;  %26 = vrot.lane.b32.xlu1 %v115_v3, %s170_s17 }
   0x7   :  { %2 = vsyncpa [#allocation1], 0  ;;  %s171_s24 = smov 88   ;;  %s172_s25 = smov 80   ;;  %5 = vst.msk [vmem:[#allocation2] sm:$0x1] %vm4_vm0, %v3_v6  }
   0x8   :  { %v118_v7 = vld [vmem:[%s253_s0 + $0x9] sm:$0x1]   ;;  %v119_v8 = vld [vmem:[%s253_s0 + $0x8] sm:$0x1]   ;;  %s173_s30 = smov 72   ;;  %s174_s2 = smov 64  }
   0x9   :  { %v120_v9 = vld [vmem:[%s253_s0 + $0x7] sm:$0x1]   ;;  %v121_v10 = vld [vmem:[%s253_s0 + $0x6] sm:$0x1]   ;;  %s175_s7 = smov 56   ;;  %s176_s8 = smov 48  }
   0xa   :  { %32 = vrot.lane.b32.xlu0 %v116_v4, %s171_s24  ;;  %38 = vrot.lane.b32.xlu1 %v117_v5, %s172_s25  ;;  %v122_v11 = vld [vmem:[%s253_s0 + $0x5] sm:$0x1]   ;;  %v123_v12 = vld [vmem:[%s253_s0 + $0x4] sm:$0x1]   ;;  %s177_s13 = smov 40   ;;  %s178_s14 = smov 32  }
   0xb   :  { %v124_v13 = vld [vmem:[%s253_s0 + $0x3] sm:$0x1]   ;;  %v125_v14 = vld [vmem:[%s253_s0 + $0x2] sm:$0x1]   ;;  %s179_s19 = smov 24   ;;  %s180_s20 = smov 16  }
   0xc   :  { %v126_v15 = vld [vmem:[%s253_s0 + $0x1] sm:$0x1]   ;;  %s181_s0 = smov 8   ;;  %vm10_vm1 = vcmask 1048512   ;;  %vm16_vm2 = vcmask 982912   ;;  %vm22_vm3 = vcmask 917312  }
   0xd   :  { %vm28_vm4 = vcmask 851712   ;;  %vm34_vm5 = vcmask 786112   ;;  %vm40_vm6 = vcmask 720512   ;;  %vm46_vm7 = vcmask 654912   ;;  %s182_s23 = smov [#allocation0]  }
   0xe   :  { %44 = vrot.lane.b32.xlu0 %v118_v7, %s173_s30  ;;  %50 = vrot.lane.b32.xlu1 %v119_v8, %s174_s2  ;;  %vm52_vm8 = vcmask 589312   ;;  %vm58_vm9 = vcmask 523712   ;;  %vm64_vm10 = vcmask 458112   ;;  %vm70_vm11 = vcmask 392512   ;;  %s106_s24 = sshll.u32 %s182_s23, 4  ;;  %s107_s24 = int_to_ptr.vmem [resolvable:$true] %s106_s24 }
   0xf   :  { %vm76_vm12 = vcmask 326912   ;;  %vm82_vm13 = vcmask 261312   ;;  %vm88_vm14 = vcmask 195712   ;;  %vm94_vm15 = vcmask 130112   ;;  %s143_s25 = scalar_lea.vmem %s107_s24, 16  ;;  %s147_s26 = scalar_lea.vmem %s107_s24, 32 }
  0x10   :  { %p144_p0 = scmp.ne.s32.totalorder %s107_s24, %s143_s25  ;;  %p148_p1 = scmp.lt.s32.totalorder %s107_s24, %s107_s24 }
  0x11   :  { %p149_p2 = scmp.lt.s32.totalorder %s147_s26, %s143_s25 }
  0x12   :  { %56 = vrot.lane.b32.xlu0 %v120_v9, %s175_s7  ;;  %62 = vrot.lane.b32.xlu1 %v121_v10, %s176_s8 }
  0x13   :  { %p150_p3 = por %p149_p2, %p148_p1 }
  0x15   :  { %p151_p4 = pnand %p150_p3, %p144_p0 }
  0x16   :  { %68 = vrot.lane.b32.xlu0 %v122_v11, %s177_s13  ;;  %74 = vrot.lane.b32.xlu1 %v123_v12, %s178_s14 }
  0x1a   :  { %80 = vrot.lane.b32.xlu0 %v124_v13, %s179_s19  ;;  %86 = vrot.lane.b32.xlu1 %v125_v14, %s180_s20 }
  0x1e   :  { %92 = vrot.lane.b32.xlu0 %v126_v15, %s181_s0 }
  0x74   :  { %v9_v16 = vpop.permute.xlu0 %8   ;;  %v21_v17 = vpop.permute.xlu1 %20  }
  0x75   :  { %11 = vst.msk [vmem:[#allocation2] sm:$0x1] %vm10_vm1, %v9_v16  }
  0x78   :  { %v15_v18 = vpop.permute.xlu0 %14   ;;  %v27_v19 = vpop.permute.xlu1 %26  }
  0x79   :  { %17 = vst.msk [vmem:[#allocation2] sm:$0x1] %vm16_vm2, %v15_v18  }
  0x7a   :  { %23 = vst.msk [vmem:[#allocation2] sm:$0x1] %vm22_vm3, %v21_v17  }
  0x7b   :  { %29 = vst.msk [vmem:[#allocation2] sm:$0x1] %vm28_vm4, %v27_v19  }
  0x7c   :  { %v33_v20 = vpop.permute.xlu0 %32   ;;  %v39_v21 = vpop.permute.xlu1 %38  }
  0x7d   :  { %35 = vst.msk [vmem:[#allocation2] sm:$0x1] %vm34_vm5, %v33_v20  }
  0x7e   :  { %41 = vst.msk [vmem:[#allocation2] sm:$0x1] %vm40_vm6, %v39_v21  }
  0x80   :  { %v45_v22 = vpop.permute.xlu0 %44   ;;  %v51_v23 = vpop.permute.xlu1 %50  }
  0x81   :  { %47 = vst.msk [vmem:[#allocation2] sm:$0x1] %vm46_vm7, %v45_v22  }
  0x82   :  { %53 = vst.msk [vmem:[#allocation2] sm:$0x1] %vm52_vm8, %v51_v23  }
  0x84   :  { %v57_v24 = vpop.permute.xlu0 %56   ;;  %v63_v25 = vpop.permute.xlu1 %62  }
  0x85   :  { %59 = vst.msk [vmem:[#allocation2] sm:$0x1] %vm58_vm9, %v57_v24  }
  0x86   :  { %65 = vst.msk [vmem:[#allocation2] sm:$0x1] %vm64_vm10, %v63_v25  }
  0x88   :  { %v69_v26 = vpop.permute.xlu0 %68   ;;  %v75_v27 = vpop.permute.xlu1 %74  }
  0x89   :  { %71 = vst.msk [vmem:[#allocation2] sm:$0x1] %vm70_vm11, %v69_v26  }
  0x8a   :  { %77 = vst.msk [vmem:[#allocation2] sm:$0x1] %vm76_vm12, %v75_v27  }
  0x8c   :  { %v81_v28 = vpop.permute.xlu0 %80   ;;  %v87_v29 = vpop.permute.xlu1 %86  }
  0x8d   :  { %83 = vst.msk [vmem:[#allocation2] sm:$0x1] %vm82_vm13, %v81_v28  }
  0x8e   :  { %89 = vst.msk [vmem:[#allocation2] sm:$0x1] %vm88_vm14, %v87_v29  }
  0x90   :  { %v93_v30 = vpop.permute.xlu0 %92  }
  0x91   :  { %95 = vst.msk [vmem:[#allocation2] sm:$0x1] %vm94_vm15, %v93_v30  }
  0x98   :  { %v99_v31 = vld [vmem:[#allocation2] sm:$0x1] }
  0x99   :  { %101 = vst [vmem:[#allocation0] sm:$0x1] %v99_v31 }
  0x9a   :  { %154 = shalt.err (!%p151_p4)
}
  0x9b   :  { %s155_s29 = scalar_lea.hbm %s254_s1, 16 }
  0x9c   :  { %p156_p5 = scmp.ne.s32.totalorder %s254_s1, %s155_s29  ;;  %p159_p6 = scmp.lt.u32.totalorder %s155_s29, %s254_s1 }
  0x9e   :  { %p161_p7 = pnand %p159_p6, %p156_p5 }
  0xa0   :  { %164 = shalt.err (!%p161_p7)
}
  0xa1   :  { %109 = dma.vmem_to_hbm [thread:$0]  %s107_s24, 16, %s254_s1, [#allocation1]  }
  0xa2   :  { %165 = dma.done.wait [#allocation1], 16  }
  0xa3   :  { %166 = vsyncadd [#allocation1], 4294967280 }
  0xa4   :  { %111 = vsyncpa [#allocation1], 1 }

// kernel: residual_block_no_bn_3d.1
= control target key start
LH: loop header
LB: loop body
LE: loop exit
PB: predicated region body
PF: predicated region fallthrough
CT: control target
= control target key end

     0   :  { %s4459_s0 = inlined_call_operand.hbm [shape: f32[2,4,8,128], index: 0, kind: input, shape index: {}]   ;;  %s4460_s1 = inlined_call_operand.hbm [shape: bf16[9,128,128], index: 1, kind: input, shape index: {}]   ;;  %s4461_s2 = inlined_call_operand.hbm [shape: f32[1,128], index: 2, kind: input, shape index: {}]   ;;  %s4462_s3 = inlined_call_operand.hbm [shape: bf16[9,128,128], index: 3, kind: input, shape index: {}]   ;;  %s4463_s4 = inlined_call_operand.hbm [shape: f32[1,128], index: 4, kind: input, shape index: {}]   ;;  %s4464_s5 = inlined_call_operand.<no memory space> [shape: f32[1], index: 5, kind: input, shape index: {}]   ;;  %s4465_s6 = inlined_call_operand.hbm [shape: f32[2,32,128], index: 6, kind: output, shape index: {}]  }
   0x1   :  { %11 = sst [smem:[#allocation4]] %s4464_s5 }
   0x2   :  { %12 = vsyncpa [#allocation6], 0 }
   0x3   :  { %14 = vsyncpa [#allocation6 + $0x1], 0 }
   0x4   :  { %15 = vsyncpa [#allocation9], 0 }
   0x5   :  { %16 = vsyncpa [#allocation12], 0 }
   0x6   :  { %17 = vsyncpa [#allocation7], 0 }
   0x7   :  { %19 = vsyncpa [#allocation7 + $0x1], 0  ;;  %s4044_s23 = smov 0   ;;  %s4046_s24 = smov 0  }
   0x8   :  { %s4048_s25 = smov 0   ;;  %s4050_s26 = smov 0  }
   0x9 LB: > { %s4065_s5 = sadd.s32 4294967295, %s3991_s26   ;;  %s2759_s27 = sadd.s32 4294967294, %s3991_s26   ;;  %s3991_s26 = sphi %s4050_s26, %s4488_s26   ;;  %s3987_s25 = sphi %s4048_s25, %s4487_s25   ;;  %s3983_s24 = sphi %s4046_s24, %s4486_s24   ;;  %s3979_s23 = sphi %s4044_s23, %s4485_s23  }
   0xa   : > { %p45_p0 = scmp.ne.s32.totalorder %s3983_s24, %s3979_s23  ;;  %p4466_p1 = scmp.eq.s32.totalorder %s4065_s5, 0 }
   0xb   : > { %p180_p3 = scmp.eq.s32.totalorder %s2759_s27, 1  ;;  %p2760_p5 = scmp.ge.s32.totalorder %s3991_s26, 1 }
   0xc   : > { %p4074_p4 = por %p4466_p1, %p45_p0  ;;  %p187_p7 = scmp.lt.s32.totalorder %s3991_s26, 3 }
   0xd   : > { %p4079_p6 = por %p180_p3, %p45_p0  ;;  %s3993_s7 = smov [#allocation8]  }
   0xe   : > { %s4469_s28 = scalar_select %p4074_p4, 1, 0 }
   0xf   : > { %s4470_s29 = scalar_select %p4079_p6, 1, 0 }
  0x10   : > { %p4084_p8 = pnand %p2760_p5, %p187_p7  ;;  %s199_s8 = sshll.u32 %s3993_s7, 4  ;;  %s4088_s8 = int_to_ptr.vmem [resolvable:$true] %s199_s8 }
  0x11   : > { %s3994_s10 = smov [#allocation11]   ;;  %s3995_s12 = smov [#allocation10]  }
  0x12   : > { %s4471_s30 = scalar_select %p4084_p8, 1, 0 }
  0x13   : > { %p3553_p9 = pneg %p4084_p8  ;;  %s223_s11 = sshll.u32 %s3994_s10, 4  ;;  %s4099_s11 = int_to_ptr.vmem [resolvable:$true] %s223_s11 }
  0x14   : > { %s4101_s13 = sshll.u32 %s3995_s12, 4  ;;  %s3775_s16 = scalar_lea.hbm %s4460_s1, 9216  ;;  %s214_s13 = int_to_ptr.vmem [resolvable:$true] %s4101_s13 }
  0x15   : > { %p4095_p11 = pnand %p3553_p9, %p4466_p1  ;;  %p3776_p12 = scmp.ne.s32.totalorder %s4460_s1, %s3775_s16 }
  0x16   : > { %p3782_p5 = scmp.lt.u32.totalorder %s3775_s16, %s4460_s1 }
  0x17   : > { %p4111_p13 = pneg %p4095_p11 }
  0x19   : > { %p3778_p0 = pnand %p4111_p13, %p3776_p12 }
  0x1b   : > { %p3779_p3 = pneg %p3778_p0 }
  0x1d   : > { %p3784_p7 = pnand %p3782_p5, %p3779_p3 }
  0x1f   : > { %3787 = shalt.err (!%p3784_p7)
}
  0x20   : > { %s3788_s22 = scalar_lea.vmem %s4088_s8, 9216  ;;  %p3796_p2 = scmp.lt.s32.totalorder %s4088_s8, %s4088_s8 }
  0x21   : > { %p3789_p9 = scmp.ne.s32.totalorder %s4088_s8, %s3788_s22  ;;  %p3797_p6 = scmp.lt.s32.totalorder %s3788_s22, %s3788_s22 }
  0x23   : > { %p3791_p10 = pnand %p3789_p9, %p4111_p13  ;;  %p3798_p12 = por %p3797_p6, %p3796_p2 }
  0x25   : > { %p3792_p1 = pneg %p3791_p10 }
  0x27   : > { %p3799_p0 = pnand %p3798_p12, %p3792_p1 }
  0x29   : > { %3802 = shalt.err (!%p3799_p0)
}
  0x2a   : > { %s3996_s27 = smov 64   ;;  %s3997_s7 = smov 4  }
  0x2b   : > { %3556 = dma.hbm_to_vmem [thread:$0]  (!%p4095_p11), %s4460_s1, 9216, %s4088_s8, [#allocation9], %s3996_s27, %s3996_s27, %s3997_s7  }
  0x2c   : > { %s3803_s16 = scalar_lea.hbm %s4462_s3, 9216 }
  0x2d   : > { %p3804_p2 = scmp.ne.s32.totalorder %s4462_s3, %s3803_s16  ;;  %p3810_p10 = scmp.lt.u32.totalorder %s3803_s16, %s4462_s3 }
  0x2f   : > { %p3806_p1 = pnand %p3804_p2, %p4111_p13 }
  0x31   : > { %p3807_p6 = pneg %p3806_p1 }
  0x33   : > { %p3812_p3 = pnand %p3810_p10, %p3807_p6 }
  0x35   : > { %3815 = shalt.err (!%p3812_p3)
}
  0x36   : > { %s3816_s8 = scalar_lea.vmem %s4099_s11, 9216  ;;  %p3824_p12 = scmp.lt.s32.totalorder %s4099_s11, %s4099_s11 }
  0x37   : > { %p3817_p5 = scmp.ne.s32.totalorder %s4099_s11, %s3816_s8  ;;  %p3825_p0 = scmp.lt.s32.totalorder %s3816_s8, %s3816_s8 }
  0x39   : > { %p3819_p7 = pnand %p3817_p5, %p4111_p13  ;;  %p3826_p2 = por %p3825_p0, %p3824_p12 }
  0x3b   : > { %p3820_p9 = pneg %p3819_p7 }
  0x3d   : > { %p3827_p1 = pnand %p3826_p2, %p3820_p9 }
  0x3f   : > { %3830 = shalt.err (!%p3827_p1)
}
  0x40   : > { %3562 = dma.hbm_to_vmem [thread:$0]  (!%p4095_p11), %s4462_s3, 9216, %s4099_s11, [#allocation12], %s3996_s27, %s3996_s27, %s3997_s7  }
  0x41   : > { %s3831_s15 = scalar_lea.hbm %s4461_s2, 16 }
  0x42   : > { %p3832_p6 = scmp.ne.s32.totalorder %s4461_s2, %s3831_s15  ;;  %p3838_p5 = scmp.lt.u32.totalorder %s3831_s15, %s4461_s2 }
  0x44   : > { %p3834_p10 = pnand %p3832_p6, %p4111_p13 }
  0x46   : > { %p3835_p3 = pneg %p3834_p10 }
  0x48   : > { %p3840_p7 = pnand %p3838_p5, %p3835_p3 }
  0x4a   : > { %3843 = shalt.err (!%p3840_p7)
}
  0x4b   : > { %s3844_s21 = scalar_lea.vmem %s214_s13, 16  ;;  %s3851_s11 = scalar_lea.vmem %s214_s13, 32 }
  0x4c   : > { %p3845_p9 = scmp.ne.s32.totalorder %s214_s13, %s3844_s21  ;;  %p3852_p2 = scmp.lt.s32.totalorder %s214_s13, %s214_s13 }
  0x4d   : > { %p3853_p1 = scmp.lt.s32.totalorder %s3851_s11, %s3844_s21 }
  0x4e   : > { %p3847_p12 = pnand %p3845_p9, %p4111_p13 }
  0x4f   : > { %p3854_p4 = por %p3853_p1, %p3852_p2 }
  0x50   : > { %p3848_p0 = pneg %p3847_p12 }
  0x52   : > { %p3855_p8 = pnand %p3854_p4, %p3848_p0 }
  0x54   : > { %3858 = shalt.err (!%p3855_p8)
}
  0x55   : > { %3559 = dma.hbm_to_vmem [thread:$0]  (!%p4095_p11), %s4461_s2, 16, %s214_s13, [#allocation9]  }
  0x56   : > { %s3998_s8 = smov [#allocation13]   ;;  %s3859_s14 = scalar_lea.hbm %s4463_s4, 16 }
  0x57   : > { %s237_s22 = sshll.u32 %s3998_s8, 4  ;;  %p3860_p6 = scmp.ne.s32.totalorder %s4463_s4, %s3859_s14  ;;  %s238_s22 = int_to_ptr.vmem [resolvable:$true] %s237_s22 }
  0x58   : > { %p3866_p10 = scmp.lt.u32.totalorder %s3859_s14, %s4463_s4 }
  0x59   : > { %p3862_p4 = pnand %p3860_p6, %p4111_p13 }
  0x5b   : > { %p3863_p8 = pneg %p3862_p4 }
  0x5d   : > { %p3868_p3 = pnand %p3866_p10, %p3863_p8 }
  0x5f   : > { %3871 = shalt.err (!%p3868_p3)
}
  0x60   : > { %s3872_s13 = scalar_lea.vmem %s238_s22, 16  ;;  %s3879_s20 = scalar_lea.vmem %s238_s22, 32 }
  0x61   : > { %p3873_p5 = scmp.ne.s32.totalorder %s238_s22, %s3872_s13  ;;  %p3880_p12 = scmp.lt.s32.totalorder %s238_s22, %s238_s22 }
  0x62   : > { %p3881_p0 = scmp.lt.s32.totalorder %s3879_s20, %s3872_s13 }
  0x63   : > { %p3875_p7 = pnand %p3873_p5, %p4111_p13 }
  0x64   : > { %p3882_p2 = por %p3881_p0, %p3880_p12 }
  0x65   : > { %p3876_p9 = pneg %p3875_p7 }
  0x67   : > { %p3883_p1 = pnand %p3882_p2, %p3876_p9 }
  0x69   : > { %3886 = shalt.err (!%p3883_p1)
}
  0x6a   : > { %3565 = dma.hbm_to_vmem [thread:$0]  (!%p4095_p11), %s4463_s4, 16, %s238_s22, [#allocation12]  }
  0x6b   : > { %s4193_s19 = sadd.s32 1, %s3991_s26   ;;  %s32_s27 = sadd.s32 1, %s3987_s25 }
  0x6c   : > { %s29_s9 = ssub.s32 %s3991_s26, %s4193_s19  ;;  %p39_p13 = scmp.ne.s32.totalorder %s3987_s25, %s3983_s24 }
  0x6d   : > { %p30_p6 = scmp.eq.s32.totalorder %s29_s9, 0  ;;  %p40_p4 = scmp.eq.s32.totalorder %s3991_s26, 0 }
  0x6e   : > { %p4474_p8 = scmp.eq.s32.totalorder %s4065_s5, 1  ;;  %p3578_p3 = scmp.lt.s32.totalorder %s3991_s26, 2 }
  0x6f   : > { %s4209_s8 = scalar_select %p30_p6, %s3987_s25, %s32_s27  }
  0x70   : > { %p4203_p10 = por %p4474_p8, %p39_p13  ;;  %p41_p5 = por %p40_p4, %p39_p13 }
  0x71   : > { %s251_s10 = sand.u32 1, %s3987_s25   ;;  %s2927_s22 = sshll.u32 %s3991_s26, 9 }
  0x72   : > { %s2766_s12 = sshll.u32 %s251_s10, 5  ;;  %s4216_s16 = scalar_lea.hbm %s4459_s0, %s2927_s22 }
  0x73   : > { %s255_s17 = scalar_lea.vmem [#allocation5], %s2766_s12  ;;  %p4220_p11 = pnand %p3578_p3, %p41_p5 }
  0x74   : > { %s262_s18 = sshll.u32 %s255_s17, 4  ;;  %s4224_s20 = scalar_lea.sflag [#allocation6], %s251_s10  ;;  %s4218_s18 = int_to_ptr.vmem [resolvable:$true] %s262_s18 }
  0x75   : > { %s3887_s21 = scalar_lea.hbm %s4216_s16, 512  ;;  %p3889_p9 = pneg %p4220_p11 }
  0x76   : > { %p3888_p7 = scmp.ne.s32.totalorder %s4216_s16, %s3887_s21  ;;  %s3892_s9 = scalar_lea.hbm %s4459_s0, 1024 }
  0x77   : > { %p3893_p2 = scmp.lt.u32.totalorder %s4216_s16, %s4459_s0  ;;  %p3894_p1 = scmp.lt.u32.totalorder %s3892_s9, %s3887_s21 }
  0x78   : > { %p3890_p12 = pnand %p3889_p9, %p3888_p7  ;;  %p3896_p6 = scmp.lt.u32.totalorder %s3887_s21, %s4216_s16 }
  0x79   : > { %p3895_p13 = por %p3894_p1, %p3893_p2 }
  0x7a   : > { %p3891_p0 = pneg %p3890_p12 }
  0x7b   : > { %p3897_p4 = por %p3896_p6, %p3895_p13 }
  0x7d   : > { %p3898_p8 = pnand %p3897_p4, %p3891_p0 }
  0x7f   : > { %3901 = shalt.err (!%p3898_p8)
}
  0x80   : > { %s3902_s10 = scalar_lea.vmem %s4218_s18, 512  ;;  %s3999_s14 = smov [#allocation5]  }
  0x81   : > { %p3903_p3 = scmp.ne.s32.totalorder %s4218_s18, %s3902_s10  ;;  %s3907_s15 = sshll.u32 %s3999_s14, 4  ;;  %s3908_s15 = int_to_ptr.vmem [resolvable:$false] %s3907_s15 }
  0x82   : > { %s3909_s17 = scalar_lea.vmem %s3908_s15, 1024  ;;  %p3910_p12 = scmp.lt.s32.totalorder %s4218_s18, %s3908_s15 }
  0x83   : > { %p3905_p5 = pnand %p3903_p3, %p3889_p9  ;;  %p3911_p2 = scmp.lt.s32.totalorder %s3909_s17, %s3902_s10 }
  0x85   : > { %p3906_p7 = pneg %p3905_p5  ;;  %p3912_p1 = por %p3911_p2, %p3910_p12 }
  0x87   : > { %p3913_p13 = pnand %p3912_p1, %p3906_p7 }
  0x89   : > { %3916 = shalt.err (!%p3913_p13)
}
  0x8a   : > { %s4000_s21 = smov 128   ;;  %s4001_s11 = smov 8  }
  0x8b   : > { %3569 = dma.hbm_to_vmem [thread:$0]  (!%p4220_p11), %s4216_s16, 512, %s4218_s18, %s4224_s20, %s4000_s21, %s4000_s21, %s4001_s11  }
  0x8c   : > { %p4477_p9 = scmp.ne.s32.totalorder %s4471_s30, 0 }
  0x8d   : > { %s4255_s27 = sand.u32 (!%p4477_p9), 1, %s3983_s24   ;;  %p4478_p0 = scmp.ne.s32.totalorder (!%p4477_p9), %s4469_s28, 0 }
  0x8e   : > { %274 = sbr.rel (%p4477_p9) target bundleno = 1158 (0x486), region = 44  ;;  %s2770_s9 = sshll.u32 (!%p4477_p9), %s4255_s27, 5 }
  0x8f   : > { %s277_s12 = scalar_lea.sflag (!%p4477_p9), [#allocation6], %s4255_s27  ;;  %s4261_s22 = scalar_lea.vmem (!%p4477_p9), [#allocation5], %s2770_s9 }
  0x95   : > { %3962 = dma.done.wait (%p4478_p0), %s277_s12, 512  }
  0x96   : > { %3964 = vsyncadd (%p4478_p0), %s277_s12, 4294966784  ;;  %p4479_p11 = scmp.eq.s32.totalorder %s4065_s5, 0 }
  0x98   : > { %3966 = dma.done.wait (%p4479_p11), [#allocation9], 9232   ;;  %p4480_p6 = pmov %p4479_p11 }
  0x9a   : > { %3968 = vsyncadd (%p4480_p6), [#allocation9], 4294958064  ;;  %p4481_p4 = pmov %p4480_p6 }
  0x9c   : > { %3970 = dma.done.wait (%p4481_p4), [#allocation12], 9232   ;;  %p4482_p8 = pmov %p4481_p4 }
  0x9d   : > { %v4002_v0 = vmov 0.0   ;;  %v3627_v1 = vld [vmem:[#allocation8 + $0x40] sm:$0xff]   ;;  %v3628_v2 = vld [vmem:[#allocation8 + $0x48] sm:$0xff]   ;;  %v3629_v3 = vld [vmem:[#allocation8 + $0x50] sm:$0xff]   ;;  %s1488_s28 = sld [smem:[#allocation4]]  ;;  %s324_s30 = scalar_lea.vmem [#allocation14], %s2770_s9 }
  0x9e   : > { %3972 = vsyncadd (%p4482_p8), [#allocation12], 4294958064  ;;  %326 = vst [vmem:[#allocation2] sm:$0xff] %v4002_v0  ;;  %3109 = vmatprep.subr.bf16.mxu0 %v3627_v1  ;;  %v3630_v4 = vld [vmem:[#allocation8 + $0x58] sm:$0xff]   ;;  %v4276_v5 = vld [vmem:[%s4261_s22] sm:$0xff]  ;;  %s2648_s16 = sshll.u32 %s324_s30, 4  ;;  %s4410_s16 = int_to_ptr.vmem [resolvable:$true] %s2648_s16 }
  0x9f   : > { %327 = vst [vmem:[#allocation2 + $0x8] sm:$0x3] %v4002_v0  ;;  %329 = vst [vmem:[#allocation2 + $0x50] sm:$0xff] %v4002_v0  ;;  %3110 = vmatpush3.bf16.msra.mxu0 %v3627_v1  ;;  %v4281_v8 = vld [vmem:[%s4261_s22 + $0x8] sm:$0xff]  ;;  %v4284_v9 = vld [vmem:[%s4261_s22 + $0x10] sm:$0xff]  ;;  %s2928_s18 = sshll.u32 %s4065_s5, 9 }
  0xa0   : > { %330 = vst [vmem:[#allocation2 + $0x58] sm:$0x3] %v4002_v0  ;;  %332 = vst [vmem:[#allocation2 + $0x10] sm:$0x1] %v4002_v0  ;;  %3111 = vmatprep.subr.bf16.mxu0 %v3628_v2  ;;  %v3631_v10 = vld [vmem:[#allocation8 + $0x60] sm:$0xff]   ;;  %v3632_v11 = vld [vmem:[#allocation8 + $0x68] sm:$0xff]   ;;  %v4292_v17 = vpack.c.bf16 %v4284_v9, %v4281_v8  ;;  %v860_v57 = vpack.c.bf16 %v4281_v8, %v4276_v5  ;;  %s4415_s5 = scalar_lea.hbm %s4465_s6, %s2928_s18 }
  0xa1   : > { %333 = vst [vmem:[#allocation2 + $0x20] sm:$0x1] %v4002_v0  ;;  %334 = vst [vmem:[#allocation2 + $0x30] sm:$0x1] %v4002_v0  ;;  %v3633_v12 = vld [vmem:[#allocation8 + $0x70] sm:$0xff]   ;;  %v3634_v13 = vld [vmem:[#allocation8 + $0x78] sm:$0xff]  }
  0xa2   : > { %335 = vst [vmem:[#allocation2 + $0x40] sm:$0x1] %v4002_v0  ;;  %338 = vst [vmem:[#allocation2 + $0x19] sm:$0x1] %v4002_v0  ;;  %v3635_v14 = vld [vmem:[#allocation8] sm:$0xff]   ;;  %v3636_v19 = vld [vmem:[#allocation8 + $0x8] sm:$0xff]  }
  0xa3   : > { %339 = vst [vmem:[#allocation2 + $0x29] sm:$0x1] %v4002_v0  ;;  %340 = vst [vmem:[#allocation2 + $0x39] sm:$0x1] %v4002_v0  ;;  %3112 = vmatpush3.bf16.msra.mxu0 %v3628_v2  ;;  %v3637_v20 = vld [vmem:[#allocation8 + $0x10] sm:$0xff]   ;;  %v4297_v21 = vld [vmem:[%s4261_s22 + $0x18] sm:$0xff] }
  0xa4   : > { %341 = vst [vmem:[#allocation2 + $0x49] sm:$0x1] %v4002_v0  ;;  %343 = vst [vmem:[#allocation3] sm:$0xff] %v4002_v0  ;;  %3113 = vmatprep.subr.bf16.mxu0 %v3629_v3  ;;  %v3638_v22 = vld [vmem:[#allocation8 + $0x18] sm:$0xff]   ;;  %v3639_v23 = vld [vmem:[#allocation8 + $0x20] sm:$0xff]   ;;  %v861_v2 = vpack.c.bf16 %v4297_v21, %v4284_v9  ;;  %s2635_s10 = scalar_lea.sflag [#allocation7], %s4255_s27 }
  0xa5   : > { %344 = vst [vmem:[#allocation3 + $0x8] sm:$0x3] %v4002_v0  ;;  %346 = vst [vmem:[#allocation3 + $0x50] sm:$0xff] %v4002_v0  ;;  %v3640_v24 = vld [vmem:[#allocation8 + $0x28] sm:$0xff]   ;;  %v3641_v25 = vld [vmem:[#allocation8 + $0x30] sm:$0xff]   ;;  %s3917_s14 = scalar_lea.vmem %s4410_s16, 512 }
  0xa6   : > { %347 = vst [vmem:[#allocation3 + $0x58] sm:$0x3] %v4002_v0  ;;  %349 = vst [vmem:[#allocation3 + $0x10] sm:$0x1] %v4002_v0  ;;  %v391_v6 = vld [vmem:[#allocation2 + $0x1] sm:$0xff]  ;;  %v3642_v26 = vld [vmem:[#allocation8 + $0x38] sm:$0xff]   ;;  %p3918_p3 = scmp.ne.s32.totalorder %s4410_s16, %s3917_s14 }
  0xa7   : > { %350 = vst [vmem:[#allocation3 + $0x20] sm:$0x1] %v4002_v0  ;;  %351 = vst [vmem:[#allocation3 + $0x30] sm:$0x1] %v4002_v0  ;;  %v395_v7 = vpack.c.bf16 %v4276_v5, %v391_v6  ;;  %3114 = vmatpush3.bf16.msra.mxu0 %v3629_v3  ;;  %v3643_v29 = vld [vmem:[#allocation8 + $0x80] sm:$0xff]   ;;  %v3644_v36 = vld [vmem:[#allocation8 + $0x88] sm:$0xff]  }
  0xa8   : > { %352 = vst [vmem:[#allocation3 + $0x40] sm:$0x1] %v4002_v0  ;;  %355 = vst [vmem:[#allocation3 + $0x19] sm:$0x1] %v4002_v0  ;;  %3115 = vmatprep.subr.bf16.mxu0 %v3630_v4  ;;  %v3645_v37 = vld [vmem:[#allocation8 + $0x90] sm:$0xff]   ;;  %v3646_v38 = vld [vmem:[#allocation8 + $0x98] sm:$0xff]   ;;  %p3919_p5 = pnand %p3918_p3, %p4203_p10 }
  0xa9   : > { %356 = vst [vmem:[#allocation3 + $0x29] sm:$0x1] %v4002_v0  ;;  %357 = vst [vmem:[#allocation3 + $0x39] sm:$0x1] %v4002_v0  ;;  %3125 = vmatprep.mubr.bf16.mxu0 %v395_v7  ;;  %v3647_v39 = vld [vmem:[#allocation8 + $0xa0] sm:$0xff]   ;;  %v3648_v40 = vld [vmem:[#allocation8 + $0xa8] sm:$0xff]  }
  0xaa   : > { %358 = vst [vmem:[#allocation3 + $0x49] sm:$0x1] %v4002_v0  ;;  %337 = vst [vmem:[#allocation2 + $0x9] sm:$0x1] %v4002_v0  ;;  %v3649_v41 = vld [vmem:[#allocation8 + $0xb0] sm:$0xff]   ;;  %v3650_v42 = vld [vmem:[#allocation8 + $0xb8] sm:$0xff]   ;;  %p3920_p7 = pneg %p3919_p5 }
  0xab   : > { %331 = vst [vmem:[#allocation2] sm:$0x1] %v4002_v0  ;;  %336 = vst [vmem:[#allocation2 + $0x50] sm:$0x1] %v4002_v0  ;;  %3116 = vmatpush3.bf16.msra.mxu0 %v3630_v4  ;;  %v3651_v43 = vld [vmem:[#allocation8 + $0xc0] sm:$0xff]   ;;  %v3652_v47 = vld [vmem:[#allocation8 + $0xc8] sm:$0xff]  }
  0xac   : > { %342 = vst [vmem:[#allocation2 + $0x59] sm:$0x1] %v4002_v0  ;;  %348 = vst [vmem:[#allocation3] sm:$0x1] %v4002_v0  ;;  %3117 = vmatprep.subr.bf16.mxu0 %v3631_v10  ;;  %v3653_v48 = vld [vmem:[#allocation8 + $0xd0] sm:$0xff]   ;;  %v3654_v49 = vld [vmem:[#allocation8 + $0xd8] sm:$0xff]  }
  0xad   : > { %353 = vst [vmem:[#allocation3 + $0x50] sm:$0x1] %v4002_v0  ;;  %354 = vst [vmem:[#allocation3 + $0x9] sm:$0x1] %v4002_v0  ;;  %v3655_v50 = vld [vmem:[#allocation8 + $0xe0] sm:$0xff]   ;;  %v3656_v51 = vld [vmem:[#allocation8 + $0xe8] sm:$0xff]  }
  0xae   : > { %359 = vst [vmem:[#allocation3 + $0x59] sm:$0x1] %v4002_v0  ;;  %365 = vst [vmem:[#allocation2 + $0x11] sm:$0xff] %v4276_v5  ;;  %v3657_v52 = vld [vmem:[#allocation8 + $0xf0] sm:$0xff]   ;;  %v3658_v53 = vld [vmem:[#allocation8 + $0xf8] sm:$0xff]   ;;  %s4003_s15 = smov [#allocation14]  }
  0xaf   : > { %366 = vst [vmem:[#allocation2 + $0x21] sm:$0xff] %v4281_v8  ;;  %367 = vst [vmem:[#allocation2 + $0x31] sm:$0xff] %v4284_v9  ;;  %3118 = vmatpush3.bf16.msra.mxu0 %v3631_v10  ;;  %v3659_v55 = vld [vmem:[#allocation8 + $0x100] sm:$0xff]   ;;  %v3660_v58 = vld [vmem:[#allocation8 + $0x108] sm:$0xff]   ;;  %s3921_s17 = sshll.u32 %s4003_s15, 4  ;;  %s3922_s17 = int_to_ptr.vmem [resolvable:$false] %s3921_s17 }
  0xb0   : > { %3119 = vmatprep.subr.bf16.mxu0 %v3632_v11  ;;  %368 = vst [vmem:[#allocation2 + $0x41] sm:$0xff] %v4297_v21  ;;  %v3661_v59 = vld [vmem:[#allocation8 + $0x110] sm:$0xff]   ;;  %v3662_v60 = vld [vmem:[#allocation8 + $0x118] sm:$0xff]   ;;  %v3663_v61 = vld [vmem:[#allocation8 + $0x120] sm:$0xff]   ;;  %s3923_s21 = scalar_lea.vmem %s3922_s17, 1024  ;;  %p3924_p12 = scmp.lt.s32.totalorder %s4410_s16, %s3922_s17 }
  0xb1   : > { %v608_v30 = vld [vmem:[#allocation2 + $0x2] sm:$0xff]  ;;  %v3665_v63 = vld [vmem:[#allocation8 + $0x130] sm:$0xff]   ;;  %v3666_v0 = vld [vmem:[#allocation8 + $0x138] sm:$0xff]   ;;  %p3925_p2 = scmp.lt.s32.totalorder %s3923_s21, %s3917_s14 }
  0xb2   : > { %v369_v15 = vld [vmem:[#allocation2] sm:$0xff]  ;;  %v3664_v62 = vld [vmem:[#allocation8 + $0x128] sm:$0xff]   ;;  %v3669_v6 = vld [vmem:[#allocation8 + $0x150] sm:$0xff]  }
  0xb3   : > { %3120 = vmatpush3.bf16.msra.mxu0 %v3632_v11  ;;  %v3667_v1 = vld [vmem:[#allocation8 + $0x140] sm:$0xff]   ;;  %v3668_v3 = vld [vmem:[#allocation8 + $0x148] sm:$0xff]   ;;  %v3701_v7 = vld [vmem:[#allocation11 + $0x50] sm:$0xff]   ;;  %p3926_p1 = por %p3925_p2, %p3924_p12 }
  0xb4   : > { %3121 = vmatprep.subr.bf16.mxu0 %v3633_v12  ;;  %v3699_v4 = vld [vmem:[#allocation11 + $0x40] sm:$0xff]   ;;  %v3700_v5 = vld [vmem:[#allocation11 + $0x48] sm:$0xff]   ;;  %v3670_v8 = vld [vmem:[#allocation8 + $0x158] sm:$0xff]  }
  0xb5   : > { %v4288_v16 = vld [vmem:[#allocation2 + $0x10] sm:$0xff]  ;;  %3289 = vmatprep.subr.bf16.mxu1 %v3699_v4  ;;  %v3702_v9 = vld [vmem:[#allocation11 + $0x58] sm:$0xff]   ;;  %v3672_v11 = vld [vmem:[#allocation8 + $0x168] sm:$0xff]   ;;  %p3927_p13 = pnand %p3926_p1, %p3920_p7 }
  0xb6   : > { %v373_v18 = vpack.c.bf16 %v4288_v16, %v369_v15  ;;  %v371_v27 = vld [vmem:[#allocation2 + $0x20] sm:$0xff]  ;;  %v4300_v28 = vld [vmem:[#allocation2 + $0x30] sm:$0xff]  ;;  %3290 = vmatpush3.bf16.msra.mxu1 %v3699_v4 }
  0xb7   : > { %3122 = vmatpush3.bf16.msra.mxu0 %v3633_v12  ;;  %v4302_v31 = vld [vmem:[#allocation2 + $0x12] sm:$0xff]  ;;  %v4304_v32 = vld [vmem:[#allocation2 + $0x22] sm:$0xff]  ;;  %v4307_v33 = vpack.c.bf16 %v4300_v28, %v371_v27  ;;  %v736_v46 = vpack.c.bf16 %v371_v27, %v4288_v16  ;;  %3291 = vmatprep.subr.bf16.mxu1 %v3700_v5 }
  0xb8   : > { %3123 = vmatprep.subr.bf16.mxu0 %v3634_v13  ;;  %v612_v34 = vpack.c.bf16 %v4302_v31, %v608_v30  ;;  %v984_v35 = vpack.c.bf16 %v4304_v32, %v4302_v31  ;;  %v4313_v44 = vld [vmem:[#allocation2 + $0x32] sm:$0xff]  ;;  %v4321_v54 = vld [vmem:[#allocation2 + $0x40] sm:$0xff] }
  0xb9   : > { %v4317_v45 = vpack.c.bf16 %v4313_v44, %v4304_v32  ;;  %v737_v56 = vpack.c.bf16 %v4321_v54, %v4300_v28  ;;  %v3671_v10 = vld [vmem:[#allocation8 + $0x160] sm:$0xff]   ;;  %v3673_v12 = vld [vmem:[#allocation8 + $0x170] sm:$0xff]   ;;  %v3686_v31 = vld [vmem:[#allocation8 + $0x1d8] sm:$0xff]  }
  0xba   : > { %3292 = vmatpush3.bf16.msra.mxu1 %v3700_v5  ;;  %v3675_v15 = vld [vmem:[#allocation8 + $0x180] sm:$0xff]   ;;  %v3685_v30 = vld [vmem:[#allocation8 + $0x1d0] sm:$0xff]  }
  0xbb   : > { %3124 = vmatpush3.bf16.msra.mxu0 %v3634_v13  ;;  %3293 = vmatprep.subr.bf16.mxu1 %v3701_v7  ;;  %v3674_v13 = vld [vmem:[#allocation8 + $0x178] sm:$0xff]   ;;  %v3683_v27 = vld [vmem:[#allocation8 + $0x1c0] sm:$0xff]  }
  0xbc   : > { %3129 = vmatprep.subr.bf16.mxu0 %v3635_v14  ;;  %v3687_v32 = vld [vmem:[#allocation8 + $0x1e0] sm:$0xff]  }
  0xbe   : > { %3126 = vmatmul.mubr.bf16.vlgmr.msra.gmra.mrb[0].mxu0 %v4292_v17  ;;  %3294 = vmatpush3.bf16.msra.mxu1 %v3701_v7 }
  0xbf   : > { %3130 = vmatpush3.bf16.msra.mxu0 %v3635_v14  ;;  %3145 = vmatprep.mubr.bf16.mxu0 %v373_v18  ;;  %v4332_v14 = vld [vmem:[#allocation2 + $0x42] sm:$0xff] }
  0xc0   : > { %3131 = vmatprep.subr.bf16.mxu0 %v3636_v19  ;;  %3295 = vmatprep.subr.bf16.mxu1 %v3702_v9  ;;  %v985_v16 = vpack.c.bf16 %v4332_v14, %v4313_v44  ;;  %v3676_v18 = vld [vmem:[#allocation8 + $0x188] sm:$0xff]   ;;  %v1356_v44 = vld [vmem:[#allocation2 + $0x52] sm:$0xff] }
  0xc2   : > { %3296 = vmatpush3.bf16.msra.mxu1 %v3702_v9  ;;  %v3708_v9 = vld [vmem:[#allocation11 + $0x8] sm:$0xff]  }
  0xc3   : > { %3132 = vmatpush3.bf16.msra.mxu0 %v3636_v19  ;;  %v3677_v19 = vld [vmem:[#allocation8 + $0x190] sm:$0xff]  }
  0xc4   : > { %3133 = vmatprep.subr.bf16.mxu0 %v3637_v20 }
  0xc7   : > { %3134 = vmatpush3.bf16.msra.mxu0 %v3637_v20  ;;  %v3678_v20 = vld [vmem:[#allocation8 + $0x198] sm:$0xff]  }
  0xc8   : > { %3135 = vmatprep.subr.bf16.mxu0 %v3638_v22 }
  0xcb   : > { %3136 = vmatpush3.bf16.msra.mxu0 %v3638_v22  ;;  %v3679_v22 = vld [vmem:[#allocation8 + $0x1a0] sm:$0xff]  }
  0xcc   : > { %3137 = vmatprep.subr.bf16.mxu0 %v3639_v23 }
  0xcf   : > { %3138 = vmatpush3.bf16.msra.mxu0 %v3639_v23  ;;  %v3680_v23 = vld [vmem:[#allocation8 + $0x1a8] sm:$0xff]  }
  0xd0   : > { %3139 = vmatprep.subr.bf16.mxu0 %v3640_v24 }
  0xd3   : > { %3140 = vmatpush3.bf16.msra.mxu0 %v3640_v24  ;;  %v3681_v24 = vld [vmem:[#allocation8 + $0x1b0] sm:$0xff]  }
  0xd4   : > { %3141 = vmatprep.subr.bf16.mxu0 %v3641_v25 }
  0xd7   : > { %3142 = vmatpush3.bf16.msra.mxu0 %v3641_v25  ;;  %v3682_v25 = vld [vmem:[#allocation8 + $0x1b8] sm:$0xff]  }
  0xd8   : > { %3143 = vmatprep.subr.bf16.mxu0 %v3642_v26 }
  0xdb   : > { %3144 = vmatpush3.bf16.msra.mxu0 %v3642_v26  ;;  %v1108_v26 = vld [vmem:[#allocation2 + $0x50] sm:$0xff] }
  0xdc   : > { %3149 = vmatprep.subr.bf16.mxu0 %v3643_v29  ;;  %v1110_v28 = vpack.c.bf16 %v1108_v26, %v4321_v54 }
  0xde   : > { %3146 = vmatmul.mubr.bf16.vlgmr.msra.gmra.mrb[0].mxu0 %v4307_v33 }
  0xdf   : > { %3150 = vmatpush3.bf16.msra.mxu0 %v3643_v29  ;;  %3165 = vmatprep.mubr.bf16.mxu0 %v612_v34  ;;  %v3684_v29 = vld [vmem:[#allocation8 + $0x1c8] sm:$0xff]   ;;  %v3689_v34 = vld [vmem:[#allocation8 + $0x1f0] sm:$0xff]  }
  0xe0   : > { %3151 = vmatprep.subr.bf16.mxu0 %v3644_v36 }
  0xe3   : > { %3152 = vmatpush3.bf16.msra.mxu0 %v3644_v36  ;;  %v1232_v36 = vld [vmem:[#allocation2 + $0x51] sm:$0xff] }
  0xe4   : > { %3153 = vmatprep.subr.bf16.mxu0 %v3645_v37 }
  0xe7   : > { %3154 = vmatpush3.bf16.msra.mxu0 %v3645_v37  ;;  %v1234_v37 = vpack.c.bf16 %v1232_v36, %v4297_v21  ;;  %v3697_v21 = vld [vmem:[#allocation8 + $0x230] sm:$0xff]  }
  0xe8   : > { %3155 = vmatprep.subr.bf16.mxu0 %v3646_v38  ;;  %v3721_v36 = vld [vmem:[#allocation11 + $0xb0] sm:$0xff]  }
  0xeb   : > { %3156 = vmatpush3.bf16.msra.mxu0 %v3646_v38  ;;  %v3692_v38 = vld [vmem:[#allocation8 + $0x208] sm:$0xff]  }
  0xec   : > { %3157 = vmatprep.subr.bf16.mxu0 %v3647_v39 }
  0xef   : > { %3158 = vmatpush3.bf16.msra.mxu0 %v3647_v39  ;;  %v3693_v39 = vld [vmem:[#allocation8 + $0x210] sm:$0xff]  }
  0xf0   : > { %3159 = vmatprep.subr.bf16.mxu0 %v3648_v40 }
  0xf3   : > { %3160 = vmatpush3.bf16.msra.mxu0 %v3648_v40  ;;  %v3694_v40 = vld [vmem:[#allocation8 + $0x218] sm:$0xff]  }
  0xf4   : > { %3161 = vmatprep.subr.bf16.mxu0 %v3649_v41 }
  0xf7   : > { %3162 = vmatpush3.bf16.msra.mxu0 %v3649_v41  ;;  %v3695_v41 = vld [vmem:[#allocation8 + $0x220] sm:$0xff]  }
  0xf8   : > { %3163 = vmatprep.subr.bf16.mxu0 %v3650_v42 }
  0xfb   : > { %3164 = vmatpush3.bf16.msra.mxu0 %v3650_v42  ;;  %v3696_v42 = vld [vmem:[#allocation8 + $0x228] sm:$0xff]  }
  0xfc   : > { %3169 = vmatprep.subr.bf16.mxu0 %v3651_v43 }
  0xfe   : > { %3166 = vmatmul.mubr.bf16.vlgmr.msra.gmra.mrb[0].mxu0 %v4317_v45 }
  0xff   : > { %3170 = vmatpush3.bf16.msra.mxu0 %v3651_v43  ;;  %3185 = vmatprep.mubr.bf16.mxu0 %v736_v46  ;;  %v3698_v43 = vld [vmem:[#allocation8 + $0x238] sm:$0xff]   ;;  %v3703_v46 = vld [vmem:[#allocation11 + $0x60] sm:$0xff]  }
 0x100   : > { %3171 = vmatprep.subr.bf16.mxu0 %v3652_v47  ;;  %3297 = vmatprep.subr.bf16.mxu1 %v3703_v46 }
 0x101   : > { %3298 = vmatpush3.bf16.msra.mxu1 %v3703_v46  ;;  %v3730_v46 = vld [vmem:[#allocation11 + $0xf8] sm:$0xff]  }
 0x103   : > { %3172 = vmatpush3.bf16.msra.mxu0 %v3652_v47  ;;  %v3704_v47 = vld [vmem:[#allocation11 + $0x68] sm:$0xff]  }
 0x104   : > { %3173 = vmatprep.subr.bf16.mxu0 %v3653_v48  ;;  %3299 = vmatprep.subr.bf16.mxu1 %v3704_v47 }
 0x105   : > { %3300 = vmatpush3.bf16.msra.mxu1 %v3704_v47  ;;  %v3731_v47 = vld [vmem:[#allocation11 + $0x100] sm:$0xff]  }
 0x107   : > { %3174 = vmatpush3.bf16.msra.mxu0 %v3653_v48  ;;  %v3705_v48 = vld [vmem:[#allocation11 + $0x70] sm:$0xff]  }
 0x108   : > { %3175 = vmatprep.subr.bf16.mxu0 %v3654_v49  ;;  %3301 = vmatprep.subr.bf16.mxu1 %v3705_v48 }
 0x109   : > { %3302 = vmatpush3.bf16.msra.mxu1 %v3705_v48 }
 0x10b   : > { %3176 = vmatpush3.bf16.msra.mxu0 %v3654_v49  ;;  %v3706_v49 = vld [vmem:[#allocation11 + $0x78] sm:$0xff]  }
 0x10c   : > { %3177 = vmatprep.subr.bf16.mxu0 %v3655_v50  ;;  %3303 = vmatprep.subr.bf16.mxu1 %v3706_v49 }
 0x10d   : > { %3304 = vmatpush3.bf16.msra.mxu1 %v3706_v49 }
 0x10f   : > { %3178 = vmatpush3.bf16.msra.mxu0 %v3655_v50  ;;  %v3707_v50 = vld [vmem:[#allocation11] sm:$0xff]  }
 0x110   : > { %3179 = vmatprep.subr.bf16.mxu0 %v3656_v51  ;;  %3309 = vmatprep.subr.bf16.mxu1 %v3707_v50 }
 0x113   : > { %3180 = vmatpush3.bf16.msra.mxu0 %v3656_v51  ;;  %v2848_v51 = vld [vmem:[#allocation10] ss:$0 sm:$0xff] }
 0x114   : > { %3181 = vmatprep.subr.bf16.mxu0 %v3657_v52 }
 0x117   : > { %3182 = vmatpush3.bf16.msra.mxu0 %v3657_v52 }
 0x118   : > { %3183 = vmatprep.subr.bf16.mxu0 %v3658_v53 }
 0x11b   : > { %3184 = vmatpush3.bf16.msra.mxu0 %v3658_v53  ;;  %v1493_v53 = vstv %s1488_s28 }
 0x11c   : > { %3189 = vmatprep.subr.bf16.mxu0 %v3659_v55 }
 0x11e   : > { %3186 = vmatmul.mubr.bf16.vlgmr.msra.gmra.mrb[0].mxu0 %v737_v56 }
 0x11f   : > { %3190 = vmatpush3.bf16.msra.mxu0 %v3659_v55  ;;  %3205 = vmatprep.mubr.bf16.mxu0 %v860_v57 }
 0x120   : > { %3191 = vmatprep.subr.bf16.mxu0 %v3660_v58 }
 0x123   : > { %3192 = vmatpush3.bf16.msra.mxu0 %v3660_v58 }
 0x124   : > { %3193 = vmatprep.subr.bf16.mxu0 %v3661_v59 }
 0x127   : > { %3194 = vmatpush3.bf16.msra.mxu0 %v3661_v59 }
 0x128   : > { %3195 = vmatprep.subr.bf16.mxu0 %v3662_v60 }
 0x12b   : > { %3196 = vmatpush3.bf16.msra.mxu0 %v3662_v60 }
 0x12c   : > { %3197 = vmatprep.subr.bf16.mxu0 %v3663_v61 }
 0x12f   : > { %3198 = vmatpush3.bf16.msra.mxu0 %v3663_v61 }
 0x130   : > { %3199 = vmatprep.subr.bf16.mxu0 %v3664_v62 }
 0x133   : > { %3200 = vmatpush3.bf16.msra.mxu0 %v3664_v62 }
 0x134   : > { %3201 = vmatprep.subr.bf16.mxu0 %v3665_v63 }
 0x137   : > { %3202 = vmatpush3.bf16.msra.mxu0 %v3665_v63  ;;  %v1529_v63 = vld [vmem:[#allocation3 + $0x1] sm:$0xff] }
 0x138   : > { %3203 = vmatprep.subr.bf16.mxu0 %v3666_v0 }
 0x13b   : > { %3204 = vmatpush3.bf16.msra.mxu0 %v3666_v0 }
 0x13c   : > { %3209 = vmatprep.subr.bf16.mxu0 %v3667_v1 }
 0x13e   : > { %3206 = vmatmul.mubr.bf16.vlgmr.msra.gmra.mrb[0].mxu0 %v861_v2 }
 0x13f   : > { %3210 = vmatpush3.bf16.msra.mxu0 %v3667_v1  ;;  %3225 = vmatprep.mubr.bf16.mxu0 %v984_v35  ;;  %v3690_v35 = vld [vmem:[#allocation8 + $0x1f8] sm:$0xff]  }
 0x140   : > { %3211 = vmatprep.subr.bf16.mxu0 %v3668_v3 }
 0x143   : > { %3212 = vmatpush3.bf16.msra.mxu0 %v3668_v3 }
 0x144   : > { %3213 = vmatprep.subr.bf16.mxu0 %v3669_v6 }
 0x147   : > { %3214 = vmatpush3.bf16.msra.mxu0 %v3669_v6 }
 0x148   : > { %3215 = vmatprep.subr.bf16.mxu0 %v3670_v8 }
 0x14b   : > { %3216 = vmatpush3.bf16.msra.mxu0 %v3670_v8 }
 0x14c   : > { %3217 = vmatprep.subr.bf16.mxu0 %v3671_v10 }
 0x14f   : > { %3218 = vmatpush3.bf16.msra.mxu0 %v3671_v10 }
 0x150   : > { %3219 = vmatprep.subr.bf16.mxu0 %v3672_v11 }
 0x153   : > { %3220 = vmatpush3.bf16.msra.mxu0 %v3672_v11  ;;  %v1507_v11 = vld [vmem:[#allocation3] sm:$0xff] }
 0x154   : > { %3221 = vmatprep.subr.bf16.mxu0 %v3673_v12 }
 0x157   : > { %3222 = vmatpush3.bf16.msra.mxu0 %v3673_v12  ;;  %v3709_v12 = vld [vmem:[#allocation11 + $0x10] sm:$0xff]  }
 0x158   : > { %3223 = vmatprep.subr.bf16.mxu0 %v3674_v13 }
 0x15b   : > { %3224 = vmatpush3.bf16.msra.mxu0 %v3674_v13 }
 0x15c   : > { %3229 = vmatprep.subr.bf16.mxu0 %v3675_v15 }
 0x15e   : > { %3226 = vmatmul.mubr.bf16.vlgmr.msra.gmra.mrb[0].mxu0 %v985_v16  ;;  %v3710_v16 = vld [vmem:[#allocation11 + $0x18] sm:$0xff]  }
 0x15f   : > { %3230 = vmatpush3.bf16.msra.mxu0 %v3675_v15  ;;  %3245 = vmatprep.mubr.bf16.mxu0 %v4307_v33  ;;  %v3688_v33 = vld [vmem:[#allocation8 + $0x1e8] sm:$0xff]  }
 0x160   : > { %3231 = vmatprep.subr.bf16.mxu0 %v3676_v18 }
 0x163   : > { %3232 = vmatpush3.bf16.msra.mxu0 %v3676_v18 }
 0x164   : > { %3233 = vmatprep.subr.bf16.mxu0 %v3677_v19 }
 0x167   : > { %3234 = vmatpush3.bf16.msra.mxu0 %v3677_v19 }
 0x168   : > { %3235 = vmatprep.subr.bf16.mxu0 %v3678_v20 }
 0x16b   : > { %3236 = vmatpush3.bf16.msra.mxu0 %v3678_v20  ;;  %v3711_v20 = vld [vmem:[#allocation11 + $0x20] sm:$0xff]  }
 0x16c   : > { %3237 = vmatprep.subr.bf16.mxu0 %v3679_v22 }
 0x16f   : > { %3238 = vmatpush3.bf16.msra.mxu0 %v3679_v22  ;;  %v3712_v22 = vld [vmem:[#allocation11 + $0x28] sm:$0xff]  }
 0x170   : > { %3239 = vmatprep.subr.bf16.mxu0 %v3680_v23 }
 0x173   : > { %3240 = vmatpush3.bf16.msra.mxu0 %v3680_v23  ;;  %v3713_v23 = vld [vmem:[#allocation11 + $0x30] sm:$0xff]  }
 0x174   : > { %3241 = vmatprep.subr.bf16.mxu0 %v3681_v24 }
 0x177   : > { %3242 = vmatpush3.bf16.msra.mxu0 %v3681_v24  ;;  %v3714_v24 = vld [vmem:[#allocation11 + $0x38] sm:$0xff]  }
 0x178   : > { %3243 = vmatprep.subr.bf16.mxu0 %v3682_v25 }
 0x17b   : > { %3244 = vmatpush3.bf16.msra.mxu0 %v3682_v25  ;;  %v3715_v25 = vld [vmem:[#allocation11 + $0x80] sm:$0xff]  }
 0x17c   : > { %3249 = vmatprep.subr.bf16.mxu0 %v3683_v27 }
 0x17e   : > { %3246 = vmatmul.mubr.bf16.vlgmr.msra.gmra.mrb[0].mxu0 %v1110_v28 }
 0x17f   : > { %3250 = vmatpush3.bf16.msra.mxu0 %v3683_v27  ;;  %3265 = vmatprep.mubr.bf16.mxu0 %v4292_v17  ;;  %v3691_v17 = vld [vmem:[#allocation8 + $0x200] sm:$0xff]  }
 0x180   : > { %3251 = vmatprep.subr.bf16.mxu0 %v3684_v29  ;;  %v1746_v27 = vld [vmem:[#allocation3 + $0x2] sm:$0xff] }
 0x183   : > { %3252 = vmatpush3.bf16.msra.mxu0 %v3684_v29 }
 0x184   : > { %3253 = vmatprep.subr.bf16.mxu0 %v3685_v30 }
 0x187   : > { %3254 = vmatpush3.bf16.msra.mxu0 %v3685_v30  ;;  %v3716_v30 = vld [vmem:[#allocation11 + $0x88] sm:$0xff]  }
 0x188   : > { %3255 = vmatprep.subr.bf16.mxu0 %v3686_v31 }
 0x18b   : > { %3256 = vmatpush3.bf16.msra.mxu0 %v3686_v31 }
 0x18c   : > { %3257 = vmatprep.subr.bf16.mxu0 %v3687_v32 }
 0x18f   : > { %3258 = vmatpush3.bf16.msra.mxu0 %v3687_v32  ;;  %v3717_v32 = vld [vmem:[#allocation11 + $0x90] sm:$0xff]  }
 0x190   : > { %3259 = vmatprep.subr.bf16.mxu0 %v3688_v33 }
 0x193   : > { %3260 = vmatpush3.bf16.msra.mxu0 %v3688_v33  ;;  %v3718_v33 = vld [vmem:[#allocation11 + $0x98] sm:$0xff]  }
 0x194   : > { %3261 = vmatprep.subr.bf16.mxu0 %v3689_v34 }
 0x197   : > { %3262 = vmatpush3.bf16.msra.mxu0 %v3689_v34  ;;  %v3719_v34 = vld [vmem:[#allocation11 + $0xa0] sm:$0xff]  }
 0x198   : > { %3263 = vmatprep.subr.bf16.mxu0 %v3690_v35 }
 0x19b   : > { %3264 = vmatpush3.bf16.msra.mxu0 %v3690_v35  ;;  %v3720_v35 = vld [vmem:[#allocation11 + $0xa8] sm:$0xff]  }
 0x19c   : > { %3269 = vmatprep.subr.bf16.mxu0 %v3691_v17 }
 0x19e   : > { %3266 = vmatmul.mubr.bf16.vlgmr.msra.gmra.mrb[0].mxu0 %v1234_v37  ;;  %v3723_v37 = vld [vmem:[#allocation11 + $0xc0] sm:$0xff]  }
 0x19f   : > { %3270 = vmatpush3.bf16.msra.mxu0 %v3691_v17  ;;  %3285 = vmatprep.mubr.bf16.mxu0 %v4317_v45  ;;  %v1358_v45 = vpack.c.bf16 %v1356_v44, %v4332_v14  ;;  %v3722_v17 = vld [vmem:[#allocation11 + $0xb8] sm:$0xff]   ;;  %v3728_v44 = vld [vmem:[#allocation11 + $0xe8] sm:$0xff]  }
 0x1a0   : > { %3271 = vmatprep.subr.bf16.mxu0 %v3692_v38 }
 0x1a3   : > { %3272 = vmatpush3.bf16.msra.mxu0 %v3692_v38 }
 0x1a4   : > { %3273 = vmatprep.subr.bf16.mxu0 %v3693_v39 }
 0x1a7   : > { %3274 = vmatpush3.bf16.msra.mxu0 %v3693_v39 }
 0x1a8   : > { %3275 = vmatprep.subr.bf16.mxu0 %v3694_v40 }
 0x1ab   : > { %3276 = vmatpush3.bf16.msra.mxu0 %v3694_v40  ;;  %v3724_v40 = vld [vmem:[#allocation11 + $0xc8] sm:$0xff]  }
 0x1ac   : > { %3277 = vmatprep.subr.bf16.mxu0 %v3695_v41 }
 0x1af   : > { %3278 = vmatpush3.bf16.msra.mxu0 %v3695_v41 }
 0x1b0   : > { %3279 = vmatprep.subr.bf16.mxu0 %v3696_v42 }
 0x1b3   : > { %3280 = vmatpush3.bf16.msra.mxu0 %v3696_v42  ;;  %v3725_v42 = vld [vmem:[#allocation11 + $0xd0] sm:$0xff]  }
 0x1b4   : > { %3281 = vmatprep.subr.bf16.mxu0 %v3697_v21 }
 0x1b7   : > { %3282 = vmatpush3.bf16.msra.mxu0 %v3697_v21  ;;  %v3726_v21 = vld [vmem:[#allocation11 + $0xd8] sm:$0xff]  }
 0x1b8   : > { %3283 = vmatprep.subr.bf16.mxu0 %v3698_v43 }
 0x1bb   : > { %3284 = vmatpush3.bf16.msra.mxu0 %v3698_v43  ;;  %v3727_v43 = vld [vmem:[#allocation11 + $0xe0] sm:$0xff]  }
 0x1be   : > { %3286 = vmatmul.mubr.bf16.vlgmr.msra.gmra.mrb[0].mxu0 %v1358_v45  ;;  %v3729_v45 = vld [vmem:[#allocation11 + $0xf0] sm:$0xff]  }
 0x291   : > { %v3287_v52 = vpop.f32.mrb[0].mxu0 }
 0x292   : > { %v1486_v54 = vadd.f32 %v3287_v52, %v2848_v51  ;;  %v1458_v55 = vpop.f32.mrb[1].mxu0  ;;  %v3734_v52 = vld [vmem:[#allocation11 + $0x118] sm:$0xff]  }
 0x293   : > { %v1484_v56 = vadd.f32 %v2848_v51, %v1458_v55  ;;  %v3288_v57 = vpop.f32.mrb[2].mxu0  ;;  %v3737_v55 = vld [vmem:[#allocation11 + $0x130] sm:$0xff]  }
 0x294   : > { %vm1491_vm0 = vcmp.ge.f32.partialorder %v1486_v54, 0.0  ;;  %v1496_v58 = vmul.f32 %v1493_v53, %v1486_v54  ;;  %v1487_v59 = vadd.f32 %v3288_v57, %v2848_v51  ;;  %v1461_v60 = vpop.f32.mrb[3].mxu0  ;;  %v3739_v57 = vld [vmem:[#allocation11 + $0x140] sm:$0xff]  }
 0x295   : > { %vm1489_vm1 = vcmp.ge.f32.partialorder %v1484_v56, 0.0  ;;  %v1494_v61 = vmul.f32 %v1493_v53, %v1484_v56  ;;  %v1485_v62 = vadd.f32 %v2848_v51, %v1461_v60  ;;  %v3733_v51 = vld [vmem:[#allocation11 + $0x110] sm:$0xff]   ;;  %v3742_v60 = vld [vmem:[#allocation11 + $0x158] sm:$0xff]  }
 0x296   : > { %v4342_v0 = vsel %vm1491_vm0, %v1486_v54, %v1496_v58  ;;  %vm1492_vm2 = vcmp.ge.f32.partialorder %v1487_v59, 0.0  ;;  %v1497_v1 = vmul.f32 %v1493_v53, %v1487_v59  ;;  %v3736_v54 = vld [vmem:[#allocation11 + $0x128] sm:$0xff]  }
 0x297   : > { %1505 = vst [vmem:[#allocation3 + $0x31] sm:$0xff] %v4342_v0  ;;  %v4345_v2 = vsel %vm1489_vm1, %v1484_v56, %v1494_v61  ;;  %vm1490_vm3 = vcmp.ge.f32.partialorder %v1485_v62, 0.0  ;;  %v1495_v3 = vmul.f32 %v1493_v53, %v1485_v62  ;;  %v3735_v53 = vld [vmem:[#allocation11 + $0x120] sm:$0xff]   ;;  %v3738_v56 = vld [vmem:[#allocation11 + $0x138] sm:$0xff]   ;;  %v3740_v58 = vld [vmem:[#allocation11 + $0x148] sm:$0xff]  }
 0x298   : > { %1503 = vst [vmem:[#allocation3 + $0x11] sm:$0xff] %v4345_v2  ;;  %v4348_v4 = vsel %vm1492_vm2, %v1487_v59, %v1497_v1  ;;  %v1533_v5 = vpack.c.bf16 %v4345_v2, %v1529_v63  ;;  %v3741_v59 = vld [vmem:[#allocation11 + $0x150] sm:$0xff]   ;;  %v3743_v61 = vld [vmem:[#allocation11 + $0x160] sm:$0xff]  }
 0x299   : > { %1506 = vst [vmem:[#allocation3 + $0x41] sm:$0xff] %v4348_v4  ;;  %v4352_v6 = vsel %vm1490_vm3, %v1485_v62, %v1495_v3  ;;  %v1999_v7 = vpack.c.bf16 %v4348_v4, %v4342_v0  ;;  %v3744_v62 = vld [vmem:[#allocation11 + $0x168] sm:$0xff]   ;;  %v3745_v63 = vld [vmem:[#allocation11 + $0x170] sm:$0xff]   ;;  %v3747_v1 = vld [vmem:[#allocation11 + $0x180] sm:$0xff]  }
 0x29a   : > { %1504 = vst [vmem:[#allocation3 + $0x21] sm:$0xff] %v4352_v6  ;;  %3305 = vmatprep.mubr.bf16.mxu1 %v1533_v5  ;;  %v4359_v8 = vpack.c.bf16 %v4342_v0, %v4352_v6  ;;  %v1998_v10 = vpack.c.bf16 %v4352_v6, %v4345_v2  ;;  %v3746_v0 = vld [vmem:[#allocation11 + $0x178] sm:$0xff]   ;;  %v3748_v5 = vld [vmem:[#allocation11 + $0x188] sm:$0xff]   ;;  %v3749_v6 = vld [vmem:[#allocation11 + $0x190] sm:$0xff]  }
 0x29c   : > { %3306 = vmatmul.mubr.bf16.vlgmr.msra.gmra.mrb[0].mxu1 %v4359_v8 }
 0x29d   : > { %3310 = vmatpush3.bf16.msra.mxu1 %v3707_v50  ;;  %v3732_v50 = vld [vmem:[#allocation11 + $0x108] sm:$0xff]  }
 0x29e   : > { %3311 = vmatprep.subr.bf16.mxu1 %v3708_v9  ;;  %v1510_v28 = vld [vmem:[#allocation3 + $0x30] sm:$0xff] }
 0x29f   : > { %v4364_v13 = vld [vmem:[#allocation3 + $0x10] sm:$0xff] }
 0x2a0   : > { %v1511_v14 = vpack.c.bf16 %v4364_v13, %v1507_v11  ;;  %v4369_v18 = vld [vmem:[#allocation3 + $0x12] sm:$0xff]  ;;  %v4385_v48 = vld [vmem:[#allocation3 + $0x40] sm:$0xff] }
 0x2a1   : > { %3312 = vmatpush3.bf16.msra.mxu1 %v3708_v9  ;;  %v4367_v15 = vld [vmem:[#allocation3 + $0x22] sm:$0xff]  ;;  %v1750_v31 = vpack.c.bf16 %v4369_v18, %v1746_v27  ;;  %v4377_v38 = vld [vmem:[#allocation3 + $0x32] sm:$0xff]  ;;  %v1875_v49 = vpack.c.bf16 %v4385_v48, %v1510_v28  ;;  %v3764_v27 = vld [vmem:[#allocation11 + $0x208] sm:$0xff]  }
 0x2a2   : > { %3325 = vmatprep.mubr.bf16.mxu1 %v1511_v14  ;;  %3313 = vmatprep.subr.bf16.mxu1 %v3709_v12  ;;  %v2122_v19 = vpack.c.bf16 %v4367_v15, %v4369_v18  ;;  %v1509_v26 = vld [vmem:[#allocation3 + $0x20] sm:$0xff]  ;;  %v4381_v39 = vpack.c.bf16 %v4377_v38, %v4367_v15  ;;  %v3753_v11 = vld [vmem:[#allocation11 + $0x1b0] sm:$0xff]  }
 0x2a3   : > { %v4373_v29 = vpack.c.bf16 %v1510_v28, %v1509_v26  ;;  %v1874_v41 = vpack.c.bf16 %v1509_v26, %v4364_v13  ;;  %v4397_v2 = vld [vmem:[#allocation3 + $0x42] sm:$0xff]  ;;  %v2246_v14 = vld [vmem:[#allocation3 + $0x50] sm:$0xff] }
 0x2a4   : > { %v2123_v3 = vpack.c.bf16 %v4397_v2, %v4377_v38  ;;  %v3751_v9 = vld [vmem:[#allocation11 + $0x1a0] sm:$0xff]   ;;  %v2248_v15 = vpack.c.bf16 %v2246_v14, %v4385_v48  ;;  %v3757_v18 = vld [vmem:[#allocation11 + $0x1d0] sm:$0xff]  }
 0x2a5   : > { %3314 = vmatpush3.bf16.msra.mxu1 %v3709_v12  ;;  %v3754_v12 = vld [vmem:[#allocation11 + $0x1b8] sm:$0xff]   ;;  %v3755_v13 = vld [vmem:[#allocation11 + $0x1c0] sm:$0xff]   ;;  %v3765_v28 = vld [vmem:[#allocation11 + $0x210] sm:$0xff]  }
 0x2a6   : > { %3315 = vmatprep.subr.bf16.mxu1 %v3710_v16  ;;  %v3774_v48 = vld [vmem:[#allocation2 + $0x21] sm:$0xff] }
 0x2a9   : > { %3316 = vmatpush3.bf16.msra.mxu1 %v3710_v16  ;;  %v3756_v16 = vld [vmem:[#allocation11 + $0x1c8] sm:$0xff]  }
 0x2aa   : > { %3317 = vmatprep.subr.bf16.mxu1 %v3711_v20 }
 0x2ad   : > { %3318 = vmatpush3.bf16.msra.mxu1 %v3711_v20  ;;  %v3759_v20 = vld [vmem:[#allocation11 + $0x1e0] sm:$0xff]  }
 0x2ae   : > { %3319 = vmatprep.subr.bf16.mxu1 %v3712_v22 }
 0x2b1   : > { %3320 = vmatpush3.bf16.msra.mxu1 %v3712_v22  ;;  %v3760_v22 = vld [vmem:[#allocation11 + $0x1e8] sm:$0xff]  }
 0x2b2   : > { %3321 = vmatprep.subr.bf16.mxu1 %v3713_v23 }
 0x2b5   : > { %3322 = vmatpush3.bf16.msra.mxu1 %v3713_v23  ;;  %v3761_v23 = vld [vmem:[#allocation11 + $0x1f0] sm:$0xff]  }
 0x2b6   : > { %3323 = vmatprep.subr.bf16.mxu1 %v3714_v24 }
 0x2b9   : > { %3324 = vmatpush3.bf16.msra.mxu1 %v3714_v24  ;;  %v3762_v24 = vld [vmem:[#allocation11 + $0x1f8] sm:$0xff]  }
 0x2ba   : > { %3329 = vmatprep.subr.bf16.mxu1 %v3715_v25 }
 0x2bc   : > { %3326 = vmatmul.mubr.bf16.vlgmr.msra.gmra.mrb[0].mxu1 %v4373_v29 }
 0x2bd   : > { %3330 = vmatpush3.bf16.msra.mxu1 %v3715_v25  ;;  %3345 = vmatprep.mubr.bf16.mxu1 %v1750_v31  ;;  %v2370_v25 = vld [vmem:[#allocation3 + $0x51] sm:$0xff] }
 0x2be   : > { %3331 = vmatprep.subr.bf16.mxu1 %v3716_v30  ;;  %v2372_v26 = vpack.c.bf16 %v2370_v25, %v4348_v4  ;;  %v3768_v31 = vld [vmem:[#allocation11 + $0x228] sm:$0xff]   ;;  %v3769_v4 = vld [vmem:[#allocation11 + $0x230] sm:$0xff]  }
 0x2c1   : > { %3332 = vmatpush3.bf16.msra.mxu1 %v3716_v30  ;;  %v3767_v30 = vld [vmem:[#allocation11 + $0x220] sm:$0xff]  }
 0x2c2   : > { %3333 = vmatprep.subr.bf16.mxu1 %v3717_v32 }
 0x2c5   : > { %3334 = vmatpush3.bf16.msra.mxu1 %v3717_v32  ;;  %v3770_v32 = vld [vmem:[#allocation11 + $0x238] sm:$0xff]  }
 0x2c6   : > { %3335 = vmatprep.subr.bf16.mxu1 %v3718_v33 }
 0x2c9   : > { %3336 = vmatpush3.bf16.msra.mxu1 %v3718_v33  ;;  %v2494_v33 = vld [vmem:[#allocation3 + $0x52] sm:$0xff] }
 0x2ca   : > { %3337 = vmatprep.subr.bf16.mxu1 %v3719_v34 }
 0x2cd   : > { %3338 = vmatpush3.bf16.msra.mxu1 %v3719_v34  ;;  %v2496_v34 = vpack.c.bf16 %v2494_v33, %v4397_v2 }
 0x2ce   : > { %3339 = vmatprep.subr.bf16.mxu1 %v3720_v35 }
 0x2d1   : > { %3340 = vmatpush3.bf16.msra.mxu1 %v3720_v35  ;;  %v2921_v35 = vld [vmem:[#allocation13] ss:$0 sm:$0xff] }
 0x2d2   : > { %3341 = vmatprep.subr.bf16.mxu1 %v3721_v36 }
 0x2d5   : > { %3342 = vmatpush3.bf16.msra.mxu1 %v3721_v36 }
 0x2d6   : > { %3343 = vmatprep.subr.bf16.mxu1 %v3722_v17 }
 0x2d9   : > { %3344 = vmatpush3.bf16.msra.mxu1 %v3722_v17 }
 0x2da   : > { %3349 = vmatprep.subr.bf16.mxu1 %v3723_v37 }
 0x2dc   : > { %3346 = vmatmul.mubr.bf16.vlgmr.msra.gmra.mrb[0].mxu1 %v4381_v39 }
 0x2dd   : > { %3350 = vmatpush3.bf16.msra.mxu1 %v3723_v37  ;;  %3365 = vmatprep.mubr.bf16.mxu1 %v1874_v41 }
 0x2de   : > { %3351 = vmatprep.subr.bf16.mxu1 %v3724_v40 }
 0x2e1   : > { %3352 = vmatpush3.bf16.msra.mxu1 %v3724_v40  ;;  %v3771_v40 = vld [vmem:[#allocation2 + $0x31] sm:$0xff] }
 0x2e2   : > { %3353 = vmatprep.subr.bf16.mxu1 %v3725_v42 }
 0x2e5   : > { %3354 = vmatpush3.bf16.msra.mxu1 %v3725_v42 }
 0x2e6   : > { %3355 = vmatprep.subr.bf16.mxu1 %v3726_v21 }
 0x2e9   : > { %3356 = vmatpush3.bf16.msra.mxu1 %v3726_v21 }
 0x2ea   : > { %3357 = vmatprep.subr.bf16.mxu1 %v3727_v43 }
 0x2ed   : > { %3358 = vmatpush3.bf16.msra.mxu1 %v3727_v43  ;;  %v3772_v43 = vld [vmem:[#allocation2 + $0x11] sm:$0xff] }
 0x2ee   : > { %3359 = vmatprep.subr.bf16.mxu1 %v3728_v44 }
 0x2f1   : > { %3360 = vmatpush3.bf16.msra.mxu1 %v3728_v44 }
 0x2f2   : > { %3361 = vmatprep.subr.bf16.mxu1 %v3729_v45 }
 0x2f5   : > { %3362 = vmatpush3.bf16.msra.mxu1 %v3729_v45 }
 0x2f6   : > { %3363 = vmatprep.subr.bf16.mxu1 %v3730_v46 }
 0x2f9   : > { %3364 = vmatpush3.bf16.msra.mxu1 %v3730_v46  ;;  %v3773_v46 = vld [vmem:[#allocation2 + $0x41] sm:$0xff] }
 0x2fa   : > { %3369 = vmatprep.subr.bf16.mxu1 %v3731_v47 }
 0x2fc   : > { %3366 = vmatmul.mubr.bf16.vlgmr.msra.gmra.mrb[0].mxu1 %v1875_v49 }
 0x2fd   : > { %3370 = vmatpush3.bf16.msra.mxu1 %v3731_v47  ;;  %3385 = vmatprep.mubr.bf16.mxu1 %v1998_v10  ;;  %v3752_v10 = vld [vmem:[#allocation11 + $0x1a8] sm:$0xff]  }
 0x2fe   : > { %3371 = vmatprep.subr.bf16.mxu1 %v3732_v50 }
 0x301   : > { %3372 = vmatpush3.bf16.msra.mxu1 %v3732_v50 }
 0x302   : > { %3373 = vmatprep.subr.bf16.mxu1 %v3733_v51 }
 0x305   : > { %3374 = vmatpush3.bf16.msra.mxu1 %v3733_v51 }
 0x306   : > { %3375 = vmatprep.subr.bf16.mxu1 %v3734_v52 }
 0x309   : > { %3376 = vmatpush3.bf16.msra.mxu1 %v3734_v52 }
 0x30a   : > { %3377 = vmatprep.subr.bf16.mxu1 %v3735_v53 }
 0x30d   : > { %3378 = vmatpush3.bf16.msra.mxu1 %v3735_v53 }
 0x30e   : > { %3379 = vmatprep.subr.bf16.mxu1 %v3736_v54 }
 0x311   : > { %3380 = vmatpush3.bf16.msra.mxu1 %v3736_v54 }
 0x312   : > { %3381 = vmatprep.subr.bf16.mxu1 %v3737_v55 }
 0x315   : > { %3382 = vmatpush3.bf16.msra.mxu1 %v3737_v55 }
 0x316   : > { %3383 = vmatprep.subr.bf16.mxu1 %v3738_v56 }
 0x319   : > { %3384 = vmatpush3.bf16.msra.mxu1 %v3738_v56 }
 0x31a   : > { %3389 = vmatprep.subr.bf16.mxu1 %v3739_v57 }
 0x31c   : > { %3386 = vmatmul.mubr.bf16.vlgmr.msra.gmra.mrb[0].mxu1 %v1999_v7  ;;  %v3750_v7 = vld [vmem:[#allocation11 + $0x198] sm:$0xff]  }
 0x31d   : > { %3390 = vmatpush3.bf16.msra.mxu1 %v3739_v57  ;;  %3405 = vmatprep.mubr.bf16.mxu1 %v2122_v19  ;;  %v3758_v19 = vld [vmem:[#allocation11 + $0x1d8] sm:$0xff]  }
 0x31e   : > { %3391 = vmatprep.subr.bf16.mxu1 %v3740_v58 }
 0x321   : > { %3392 = vmatpush3.bf16.msra.mxu1 %v3740_v58 }
 0x322   : > { %3393 = vmatprep.subr.bf16.mxu1 %v3741_v59 }
 0x325   : > { %3394 = vmatpush3.bf16.msra.mxu1 %v3741_v59 }
 0x326   : > { %3395 = vmatprep.subr.bf16.mxu1 %v3742_v60 }
 0x329   : > { %3396 = vmatpush3.bf16.msra.mxu1 %v3742_v60 }
 0x32a   : > { %3397 = vmatprep.subr.bf16.mxu1 %v3743_v61 }
 0x32d   : > { %3398 = vmatpush3.bf16.msra.mxu1 %v3743_v61 }
 0x32e   : > { %3399 = vmatprep.subr.bf16.mxu1 %v3744_v62 }
 0x331   : > { %3400 = vmatpush3.bf16.msra.mxu1 %v3744_v62 }
 0x332   : > { %3401 = vmatprep.subr.bf16.mxu1 %v3745_v63 }
 0x335   : > { %3402 = vmatpush3.bf16.msra.mxu1 %v3745_v63 }
 0x336   : > { %3403 = vmatprep.subr.bf16.mxu1 %v3746_v0 }
 0x339   : > { %3404 = vmatpush3.bf16.msra.mxu1 %v3746_v0 }
 0x33a   : > { %3409 = vmatprep.subr.bf16.mxu1 %v3747_v1 }
 0x33c   : > { %3406 = vmatmul.mubr.bf16.vlgmr.msra.gmra.mrb[0].mxu1 %v2123_v3 }
 0x33d   : > { %3410 = vmatpush3.bf16.msra.mxu1 %v3747_v1  ;;  %3425 = vmatprep.mubr.bf16.mxu1 %v4373_v29  ;;  %v3766_v29 = vld [vmem:[#allocation11 + $0x218] sm:$0xff]  }
 0x33e   : > { %3411 = vmatprep.subr.bf16.mxu1 %v3748_v5 }
 0x341   : > { %3412 = vmatpush3.bf16.msra.mxu1 %v3748_v5 }
 0x342   : > { %3413 = vmatprep.subr.bf16.mxu1 %v3749_v6 }
 0x345   : > { %3414 = vmatpush3.bf16.msra.mxu1 %v3749_v6 }
 0x346   : > { %3415 = vmatprep.subr.bf16.mxu1 %v3750_v7 }
 0x349   : > { %3416 = vmatpush3.bf16.msra.mxu1 %v3750_v7 }
 0x34a   : > { %3417 = vmatprep.subr.bf16.mxu1 %v3751_v9 }
 0x34d   : > { %3418 = vmatpush3.bf16.msra.mxu1 %v3751_v9 }
 0x34e   : > { %3419 = vmatprep.subr.bf16.mxu1 %v3752_v10 }
 0x351   : > { %3420 = vmatpush3.bf16.msra.mxu1 %v3752_v10 }
 0x352   : > { %3421 = vmatprep.subr.bf16.mxu1 %v3753_v11 }
 0x355   : > { %3422 = vmatpush3.bf16.msra.mxu1 %v3753_v11 }
 0x356   : > { %3423 = vmatprep.subr.bf16.mxu1 %v3754_v12 }
 0x359   : > { %3424 = vmatpush3.bf16.msra.mxu1 %v3754_v12 }
 0x35a   : > { %3429 = vmatprep.subr.bf16.mxu1 %v3755_v13 }
 0x35c   : > { %3426 = vmatmul.mubr.bf16.vlgmr.msra.gmra.mrb[0].mxu1 %v2248_v15 }
 0x35d   : > { %3430 = vmatpush3.bf16.msra.mxu1 %v3755_v13  ;;  %3445 = vmatprep.mubr.bf16.mxu1 %v4359_v8  ;;  %v3763_v8 = vld [vmem:[#allocation11 + $0x200] sm:$0xff]  }
 0x35e   : > { %3431 = vmatprep.subr.bf16.mxu1 %v3756_v16 }
 0x361   : > { %3432 = vmatpush3.bf16.msra.mxu1 %v3756_v16 }
 0x362   : > { %3433 = vmatprep.subr.bf16.mxu1 %v3757_v18 }
 0x365   : > { %3434 = vmatpush3.bf16.msra.mxu1 %v3757_v18 }
 0x366   : > { %3435 = vmatprep.subr.bf16.mxu1 %v3758_v19 }
 0x369   : > { %3436 = vmatpush3.bf16.msra.mxu1 %v3758_v19 }
 0x36a   : > { %3437 = vmatprep.subr.bf16.mxu1 %v3759_v20 }
 0x36d   : > { %3438 = vmatpush3.bf16.msra.mxu1 %v3759_v20 }
 0x36e   : > { %3439 = vmatprep.subr.bf16.mxu1 %v3760_v22 }
 0x371   : > { %3440 = vmatpush3.bf16.msra.mxu1 %v3760_v22 }
 0x372   : > { %3441 = vmatprep.subr.bf16.mxu1 %v3761_v23 }
 0x375   : > { %3442 = vmatpush3.bf16.msra.mxu1 %v3761_v23 }
 0x376   : > { %3443 = vmatprep.subr.bf16.mxu1 %v3762_v24 }
 0x379   : > { %3444 = vmatpush3.bf16.msra.mxu1 %v3762_v24 }
 0x37a   : > { %3449 = vmatprep.subr.bf16.mxu1 %v3763_v8 }
 0x37c   : > { %3446 = vmatmul.mubr.bf16.vlgmr.msra.gmra.mrb[0].mxu1 %v2372_v26 }
 0x37d   : > { %3450 = vmatpush3.bf16.msra.mxu1 %v3763_v8  ;;  %3465 = vmatprep.mubr.bf16.mxu1 %v4381_v39 }
 0x37e   : > { %3451 = vmatprep.subr.bf16.mxu1 %v3764_v27 }
 0x381   : > { %3452 = vmatpush3.bf16.msra.mxu1 %v3764_v27 }
 0x382   : > { %3453 = vmatprep.subr.bf16.mxu1 %v3765_v28 }
 0x385   : > { %3454 = vmatpush3.bf16.msra.mxu1 %v3765_v28 }
 0x386   : > { %3455 = vmatprep.subr.bf16.mxu1 %v3766_v29 }
 0x389   : > { %3456 = vmatpush3.bf16.msra.mxu1 %v3766_v29 }
 0x38a   : > { %3457 = vmatprep.subr.bf16.mxu1 %v3767_v30 }
 0x38d   : > { %3458 = vmatpush3.bf16.msra.mxu1 %v3767_v30 }
 0x38e   : > { %3459 = vmatprep.subr.bf16.mxu1 %v3768_v31 }
 0x391   : > { %3460 = vmatpush3.bf16.msra.mxu1 %v3768_v31 }
 0x392   : > { %3461 = vmatprep.subr.bf16.mxu1 %v3769_v4 }
 0x395   : > { %3462 = vmatpush3.bf16.msra.mxu1 %v3769_v4 }
 0x396   : > { %3463 = vmatprep.subr.bf16.mxu1 %v3770_v32 }
 0x399   : > { %3464 = vmatpush3.bf16.msra.mxu1 %v3770_v32 }
 0x39c   : > { %3466 = vmatmul.mubr.bf16.vlgmr.msra.gmra.mrb[0].mxu1 %v2496_v34 }
 0x46f   : > { %v3467_v36 = vpop.f32.mrb[0].mxu1 }
 0x470   : > { %v2624_v17 = vadd.f32 %v3467_v36, %v2921_v35  ;;  %v2596_v37 = vpop.f32.mrb[1].mxu1 }
 0x471   : > { %v2622_v38 = vadd.f32 %v2921_v35, %v2596_v37  ;;  %v3468_v39 = vpop.f32.mrb[2].mxu1 }
 0x472   : > { %v2628_v41 = vadd.f32 %v3771_v40, %v2624_v17  ;;  %v2625_v42 = vadd.f32 %v3468_v39, %v2921_v35  ;;  %v2599_v21 = vpop.f32.mrb[3].mxu1 }
 0x473   : > { %v2626_v44 = vadd.f32 %v3772_v43, %v2622_v38  ;;  %v2623_v45 = vadd.f32 %v2921_v35, %v2599_v21 }
 0x474   : > { %2632 = vst [vmem:[%s324_s30 + $0x10] sm:$0xff] %v2628_v41  ;;  %v2629_v47 = vadd.f32 %v3773_v46, %v2625_v42 }
 0x475   : > { %2630 = vst [vmem:[%s324_s30] sm:$0xff] %v2626_v44  ;;  %v2627_v49 = vadd.f32 %v3774_v48, %v2623_v45 }
 0x476   : > { %2633 = vst [vmem:[%s324_s30 + $0x18] sm:$0xff] %v2629_v47 }
 0x477   : > { %2631 = vst [vmem:[%s324_s30 + $0x8] sm:$0xff] %v2627_v49 }
 0x478   : > { %3930 = shalt.err (!%p3927_p13)
}
 0x479   : > { %s3931_s11 = scalar_lea.hbm %s4415_s5, 512  ;;  %s3935_s22 = scalar_lea.hbm %s4465_s6, 1024 }
 0x47a   : > { %p3932_p9 = scmp.ne.s32.totalorder %s4415_s5, %s3931_s11  ;;  %p3936_p6 = scmp.lt.u32.totalorder %s4415_s5, %s4465_s6 }
 0x47b   : > { %p3937_p4 = scmp.lt.u32.totalorder %s3935_s22, %s3931_s11  ;;  %p3939_p3 = scmp.lt.u32.totalorder %s3931_s11, %s4415_s5 }
 0x47c   : > { %p3933_p0 = pnand %p3932_p9, %p4203_p10 }
 0x47d   : > { %p3938_p8 = por %p3937_p4, %p3936_p6 }
 0x47e   : > { %p3934_p11 = pneg %p3933_p0 }
 0x47f   : > { %p3940_p5 = por %p3939_p3, %p3938_p8 }
 0x481   : > { %p3941_p7 = pnand %p3940_p5, %p3934_p11 }
 0x483   : > { %3944 = shalt.err (!%p3941_p7)
}
 0x484   : > { %s4004_s18 = smov 128   ;;  %s4005_s13 = smov 8  }
 0x485   : > { %3551 = dma.vmem_to_hbm [thread:$0]  (%p4203_p10), %s4410_s16, 512, %s4415_s5, %s2635_s10, %s4004_s18, %s4004_s18, %s4005_s13  }
 0x486 PF: > { %s2663_s20 = sand.u32 1, %s3979_s23   ;;  %p4483_p12 = scmp.ne.s32.totalorder %s4470_s29, 0 }
 0x487   : > { %p4484_p2 = scmp.ge.s32.totalorder %s3991_s26, 2  ;;  %s2664_s14 = scalar_lea.sflag [#allocation7], %s2663_s20 }
 0x489   : > { %p3571_p1 = pnand %p4484_p2, %p4483_p12 }
 0x48b   : > { %3974 = dma.done.wait (!%p3571_p1), %s2664_s14, 512  }
 0x48c   : > { %3976 = vsyncadd (!%p3571_p1), %s2664_s14, 4294966784  ;;  %p22_p13 = scmp.ge.s32.totalorder %s4193_s19, 4   ;;  %s4485_s23 = smov %s3983_s24 }
 0x48d   : > { %s4486_s24 = smov %s3987_s25  ;;  %s4487_s25 = smov %s4209_s8 }
 0x48e   : > { %s4488_s26 = smov %s4193_s19  ;;  %24 = sbr.rel (!%p22_p13) target bundleno = 9 (0x9), region = 127 }
 0x495   :  { %2669 = vsyncpa [#allocation6], 1 }
 0x496   :  { %2671 = vsyncpa [#allocation6 + $0x1], 1 }
 0x497   :  { %2672 = vsyncpa [#allocation9], 1 }
 0x498   :  { %2673 = vsyncpa [#allocation12], 1 }
 0x499   :  { %2674 = vsyncpa [#allocation7], 1 }
 0x49a   :  { %2676 = vsyncpa [#allocation7 + $0x1], 1 }

</bundles_post_ra>
